<compile_context>
chip_gen: v7x
topology: tpu7x:2x2x1
jax: 0.10.0
libtpu: 0.0.40
codegen_flags: <defaults>
</compile_context>

<pallas_src>
import jax
import jax.numpy as jnp
from jax.experimental import pallas as pl
from jax.experimental.pallas import tpu as pltpu

EMB = 768  # hidden size hard-coded in the PyTorch module

_NEG_BIG = jnp.float32(-1e30)  # mask value for padded dictionary columns


def causal_t_kernel(y_ref, wy_t_ref, zwt_ref, bias_ref, dic_ref, out_ref):
    # y_ref:    (TILE_M, D)   bf16   token rows
    # wy_t_ref: (D, D)        bf16   Wy^T
    # zwt_ref:  (D, K_pad)    bf16   (dic_z @ Wz^T + bz)^T * 1/sqrt(D)
    # bias_ref: (1, K_pad)    f32    by @ zwT_scaled, -1e30 on padded columns
    # dic_ref:  (K_pad, D)    bf16   prior[:,None] * dic_z  (zero rows in padding)
    # out_ref:  (TILE_M, D)   f32

    # Token projection: (TILE_M, D) @ (D, D) on the MXU, f32 accumulate.
    yw = jnp.dot(y_ref[...], wy_t_ref[...], preferred_element_type=jnp.float32)

    # Attention logits: (TILE_M, D) @ (D, K_pad); scale already folded into zwT.
    logits = jnp.dot(yw.astype(jnp.bfloat16), zwt_ref[...],
                     preferred_element_type=jnp.float32)
    logits = logits + bias_ref[...]            # by contribution + padding mask

    # Numerically stable softmax over the (lane-aligned) dictionary axis.
    m = jnp.max(logits, axis=-1, keepdims=True)
    e = jnp.exp(logits - m)
    att = e * pl.reciprocal(jnp.sum(e, axis=-1, keepdims=True), approx=True)

    # out = att @ (prior * dic_z): (TILE_M, K_pad) @ (K_pad, D).
    out_ref[...] = jnp.dot(att.astype(jnp.bfloat16), dic_ref[...],
                           preferred_element_type=jnp.float32).astype(out_ref.dtype)


def causal_t_forward(y, wy, by, wz, bz, dic_z, prior, *, tile_m=256):
    """y: (B, S, 768); wy/wz: (768, 768) PyTorch layout (out, in); by/bz: (768,);
    dic_z: (K, 768); prior: (K,). Returns (B, S, 768) float32."""
    B, S, D = y.shape
    K = dic_z.shape[0]
    assert D == EMB
    scale = jnp.float32(1.0 / (D ** 0.5))

    f32 = jnp.float32
    # --- Hoisted, batch-invariant preprocessing (plain XLA, f32) -----------------
    zw = dic_z.astype(f32) @ wz.astype(f32).T + bz.astype(f32)        # (K, D)
    zwt = zw.T * scale                                                # (D, K), scale folded
    att_bias = (by.astype(f32) @ zwt).reshape(1, K)                   # (1, K) exact by-fold
    dic_scaled = prior.astype(f32)[:, None] * dic_z.astype(f32)       # (K, D) exact prior-fold

    # Pad the dictionary axis to a full lane width; mask padded logits via the bias.
    K_pad = max(128, ((K + 127) // 128) * 128)
    if K_pad != K:
        zwt = jnp.pad(zwt, ((0, 0), (0, K_pad - K)))
        dic_scaled = jnp.pad(dic_scaled, ((0, K_pad - K), (0, 0)))
        att_bias = jnp.pad(att_bias, ((0, 0), (0, K_pad - K)),
                           constant_values=_NEG_BIG)

    # Flatten (B, S) into independent rows and pad to a tile multiple.
    M = B * S
    if M >= tile_m:
        tm = tile_m                                   # 256-multiple: fills the MXU
    else:
        tm = ((M + 15) // 16) * 16                    # small case: one bf16-aligned tile
    M_pad = ((M + tm - 1) // tm) * tm
    y2 = y.reshape(M, D).astype(f32)
    if M_pad != M:
        y2 = jnp.pad(y2, ((0, M_pad - M), (0, 0)))

    # bf16 matmul operands (casts after all f32 folds to avoid double rounding).
    y_bf = y2.astype(jnp.bfloat16)
    wy_t_bf = wy.astype(f32).T.astype(jnp.bfloat16)
    zwt_bf = zwt.astype(jnp.bfloat16)
    dic_bf = dic_scaled.astype(jnp.bfloat16)
    att_bias = att_bias.astype(f32)

    grid = (M_pad // tm,)

    flops = int(2 * M_pad * D * D          # y @ Wy^T
                + 2 * M_pad * D * K_pad    # attention logits
                + 2 * M_pad * K_pad * D)   # att @ dic
    bytes_accessed = int(2 * (y_bf.size + wy_t_bf.size + zwt_bf.size + dic_bf.size)
                         + 4 * att_bias.size + 4 * M_pad * D)

    out = pl.pallas_call(
        causal_t_kernel,
        out_shape=jax.ShapeDtypeStruct((M_pad, D), jnp.float32),
        grid_spec=pltpu.PrefetchScalarGridSpec(
            num_scalar_prefetch=0,
            grid=grid,
            in_specs=[
                pl.BlockSpec((tm, D), lambda i: (i, 0)),       # token rows
                pl.BlockSpec((D, D), lambda i: (0, 0)),        # Wy^T
                pl.BlockSpec((D, K_pad), lambda i: (0, 0)),    # zw^T (scaled)
                pl.BlockSpec((1, K_pad), lambda i: (0, 0)),    # attention bias / mask
                pl.BlockSpec((K_pad, D), lambda i: (0, 0)),    # prior-folded dictionary
            ],
            out_specs=pl.BlockSpec((tm, D), lambda i: (i, 0)),
        ),
        compiler_params=pltpu.CompilerParams(
            dimension_semantics=("parallel",)),
        cost_estimate=pl.CostEstimate(
            flops=flops,
            transcendentals=int(M_pad * K_pad),
            bytes_accessed=bytes_accessed),
    )(y_bf, wy_t_bf, zwt_bf, att_bias, dic_bf)

    return out[:M].reshape(B, S, D)


def causal_t_reference(y, wy, by, wz, bz, dic_z, prior):
    # Straight f32 transcription of the PyTorch forward.
    yw = jnp.einsum('bsd,ed->bse', y, wy) + by
    zw = dic_z @ wz.T + bz
    att = jax.nn.softmax(yw @ zw.T / (EMB ** 0.5), axis=-1)
    return jnp.einsum('bsk,k,kd->bsd', att, prior, dic_z)


if __name__ == "__main__":
    key = jax.random.PRNGKey(0)
    k_y, k_wy, k_wz, k_dic, k_prior = jax.random.split(key, 5)

    B, S, K, D = 2, 8, 16, EMB   # small batch/seq/dictionary; hidden fixed at 768

    y = jax.random.normal(k_y, (B, S, D), dtype=jnp.float32)

    # nn.init.normal_(std=0.02) for weights, zeros for biases
    wy = 0.02 * jax.random.normal(k_wy, (D, D), dtype=jnp.float32)
    wz = 0.02 * jax.random.normal(k_wz, (D, D), dtype=jnp.float32)
    by = jnp.zeros((D,), dtype=jnp.float32)
    bz = jnp.zeros((D,), dtype=jnp.float32)

    # Synthetic dictionary / prior (stand-ins for dic_t.npy / prior_t.npy).
    dic_z = jax.random.normal(k_dic, (K, D), dtype=jnp.float32)
    prior = jax.nn.softmax(jax.random.normal(k_prior, (K,), dtype=jnp.float32))

    out = causal_t_forward(y, wy, by, wz, bz, dic_z, prior)
    out = jax.block_until_ready(out)

    ref = causal_t_reference(y, wy, by, wz, bz, dic_z, prior)
    assert out.shape == (B, S, D)
    # bf16 MXU operands + approx reciprocal => looser-than-f32 tolerance.
    assert jnp.allclose(out, ref, rtol=3e-2, atol=3e-3), \
        f"max abs diff {jnp.max(jnp.abs(out - ref))}"

    print("KERNEL_OK")
</pallas_src>

<mosaic_0001>
module attributes {stable_mosaic.version = 11 : i64} {
  func.func @causal_t_kernel(%arg0: i32, %arg1: memref<16x768xbf16, #tpu.memory_space<vmem>>, %arg2: memref<768x768xbf16, #tpu.memory_space<vmem>>, %arg3: memref<768x128xbf16, #tpu.memory_space<vmem>>, %arg4: memref<1x128xf32, #tpu.memory_space<vmem>>, %arg5: memref<128x768xbf16, #tpu.memory_space<vmem>>, %arg6: memref<16x768xf32, #tpu.memory_space<vmem>>) attributes {dimension_semantics = [#tpu.dimension_semantics<parallel>], iteration_bounds = array<i64: 1>, scalar_prefetch = 0 : i64, scratch_operands = 0 : i64, tpu.core_type = #tpu.core_type<tc>, window_params = [{transform_indices = @transform_0, window_bounds = array<i64: 16, 768>}, {pipeline_mode = #tpu.pipeline_mode<synchronous>, transform_indices = @transform_1, window_bounds = array<i64: 768, 768>}, {pipeline_mode = #tpu.pipeline_mode<synchronous>, transform_indices = @transform_2, window_bounds = array<i64: 768, 128>}, {pipeline_mode = #tpu.pipeline_mode<synchronous>, transform_indices = @transform_3, window_bounds = array<i64: 1, 128>}, {pipeline_mode = #tpu.pipeline_mode<synchronous>, transform_indices = @transform_4, window_bounds = array<i64: 128, 768>}, {transform_indices = @transform_5, window_bounds = array<i64: 16, 768>}]} {
    %c0 = arith.constant 0 : index
    %c0_0 = arith.constant 0 : index
    %0 = vector.load %arg1[%c0, %c0_0] : memref<16x768xbf16, #tpu.memory_space<vmem>>, vector<16x768xbf16>
    %c0_1 = arith.constant 0 : index
    %c0_2 = arith.constant 0 : index
    %1 = vector.load %arg2[%c0_1, %c0_2] : memref<768x768xbf16, #tpu.memory_space<vmem>>, vector<768x768xbf16>
    %cst = arith.constant dense<0.000000e+00> : vector<16x768xf32>
    %2 = tpu.matmul %0, %1, %cst {dimension_numbers = #tpu.dot_dimension_numbers<[1], [0], [0], [1], [0, 0, 1, 1], [], []>} : vector<16x768xbf16>, vector<768x768xbf16>, vector<16x768xf32> -> vector<16x768xf32>
    %3 = arith.truncf %2 : vector<16x768xf32> to vector<16x768xbf16>
    %c0_3 = arith.constant 0 : index
    %c0_4 = arith.constant 0 : index
    %4 = vector.load %arg3[%c0_3, %c0_4] : memref<768x128xbf16, #tpu.memory_space<vmem>>, vector<768x128xbf16>
    %cst_5 = arith.constant dense<0.000000e+00> : vector<16x128xf32>
    %5 = tpu.matmul %3, %4, %cst_5 {dimension_numbers = #tpu.dot_dimension_numbers<[1], [0], [0], [1], [0, 0, 1, 1], [], []>} : vector<16x768xbf16>, vector<768x128xbf16>, vector<16x128xf32> -> vector<16x128xf32>
    %c0_6 = arith.constant 0 : index
    %c0_7 = arith.constant 0 : index
    %6 = vector.load %arg4[%c0_6, %c0_7] : memref<1x128xf32, #tpu.memory_space<vmem>>, vector<1x128xf32>
    %7 = vector.broadcast %6 : vector<1x128xf32> to vector<16x128xf32>
    %8 = arith.addf %5, %7 : vector<16x128xf32>
    %cst_8 = arith.constant dense<0xFF800000> : vector<16xf32>
    %9 = vector.multi_reduction <maximumf>, %8, %cst_8 [1] : vector<16x128xf32> to vector<16xf32>
    %10 = vector.shape_cast %9 : vector<16xf32> to vector<16x1xf32>
    %11 = vector.broadcast %10 : vector<16x1xf32> to vector<16x128xf32>
    %12 = arith.subf %8, %11 : vector<16x128xf32>
    %13 = math.exp %12 : vector<16x128xf32>
    %cst_9 = arith.constant dense<0.000000e+00> : vector<16xf32>
    %14 = vector.multi_reduction <add>, %13, %cst_9 [1] : vector<16x128xf32> to vector<16xf32>
    %15 = vector.shape_cast %14 : vector<16xf32> to vector<16x1xf32>
    %16 = tpu.reciprocal %15 {approx = true} : vector<16x1xf32> -> vector<16x1xf32>
    %17 = vector.broadcast %16 : vector<16x1xf32> to vector<16x128xf32>
    %18 = arith.mulf %13, %17 : vector<16x128xf32>
    %19 = arith.truncf %18 : vector<16x128xf32> to vector<16x128xbf16>
    %c0_10 = arith.constant 0 : index
    %c0_11 = arith.constant 0 : index
    %20 = vector.load %arg5[%c0_10, %c0_11] : memref<128x768xbf16, #tpu.memory_space<vmem>>, vector<128x768xbf16>
    %cst_12 = arith.constant dense<0.000000e+00> : vector<16x768xf32>
    %21 = tpu.matmul %19, %20, %cst_12 {dimension_numbers = #tpu.dot_dimension_numbers<[1], [0], [0], [1], [0, 0, 1, 1], [], []>} : vector<16x128xbf16>, vector<128x768xbf16>, vector<16x768xf32> -> vector<16x768xf32>
    %c0_13 = arith.constant 0 : index
    %c0_14 = arith.constant 0 : index
    %22 = vector.load %arg6[%c0_13, %c0_14] : memref<16x768xf32, #tpu.memory_space<vmem>>, vector<16x768xf32>
    tpu.vector_store %arg6[%c0_13, %c0_14], %21 {strides = array<i32>} : memref<16x768xf32, #tpu.memory_space<vmem>>, vector<16x768xf32>,
    return
  }
  func.func @transform_0(%arg0: i32) -> (i32, i32) {
    %c0_i32 = arith.constant 0 : i32
    %c0_i32_0 = arith.constant 0 : i32
    return %arg0, %c0_i32 : i32, i32
  }
  func.func @transform_1(%arg0: i32) -> (i32, i32) {
    %c0_i32 = arith.constant 0 : i32
    %c0_i32_0 = arith.constant 0 : i32
    %c0_i32_1 = arith.constant 0 : i32
    return %c0_i32, %c0_i32_0 : i32, i32
  }
  func.func @transform_2(%arg0: i32) -> (i32, i32) {
    %c0_i32 = arith.constant 0 : i32
    %c0_i32_0 = arith.constant 0 : i32
    %c0_i32_1 = arith.constant 0 : i32
    return %c0_i32, %c0_i32_0 : i32, i32
  }
  func.func @transform_3(%arg0: i32) -> (i32, i32) {
    %c0_i32 = arith.constant 0 : i32
    %c0_i32_0 = arith.constant 0 : i32
    %c0_i32_1 = arith.constant 0 : i32
    return %c0_i32, %c0_i32_0 : i32, i32
  }
  func.func @transform_4(%arg0: i32) -> (i32, i32) {
    %c0_i32 = arith.constant 0 : i32
    %c0_i32_0 = arith.constant 0 : i32
    %c0_i32_1 = arith.constant 0 : i32
    return %c0_i32, %c0_i32_0 : i32, i32
  }
  func.func @transform_5(%arg0: i32) -> (i32, i32) {
    %c0_i32 = arith.constant 0 : i32
    %c0_i32_0 = arith.constant 0 : i32
    return %arg0, %c0_i32 : i32, i32
  }
}

</mosaic_0001>

<bundles_post_ra>
// kernel: tpu_custom_call.1
= control target key start
LH: loop header
LB: loop body
LE: loop exit
PB: predicated region body
PF: predicated region fallthrough
CT: control target
= control target key end

     0   :  { %10 = vsyncpa [#allocation3], 0  ;;  %s4583_s0 = inlined_call_operand.hbm [shape: bf16[16,768], index: 0, kind: input, shape index: {}]   ;;  %s4584_s1 = inlined_call_operand.hbm [shape: bf16[768,768], index: 1, kind: input, shape index: {}]   ;;  %s4585_s2 = inlined_call_operand.hbm [shape: bf16[768,128], index: 2, kind: input, shape index: {}]   ;;  %s4586_s3 = inlined_call_operand.hbm [shape: f32[1,128], index: 3, kind: input, shape index: {}]   ;;  %s4587_s4 = inlined_call_operand.hbm [shape: bf16[128,768], index: 4, kind: input, shape index: {}]   ;;  %s4588_s5 = inlined_call_operand.hbm [shape: f32[16,768], index: 5, kind: output, shape index: {}]  }
   0x1   :  { %11 = vsyncpa [#allocation6], 0 }
   0x2   :  { %12 = vsyncpa [#allocation9], 0 }
   0x3   :  { %13 = vsyncpa [#allocation4], 0  ;;  %s4434_s18 = smov [#allocation5]   ;;  %s4435_s20 = smov [#allocation8]  }
   0x4   :  { %s31_s19 = sshll.u32 %s4434_s18, 4  ;;  %s56_s21 = sshll.u32 %s4435_s20, 4  ;;  %s32_s19 = int_to_ptr.vmem [resolvable:$true] %s31_s19  ;;  %s4477_s21 = int_to_ptr.vmem [resolvable:$true] %s56_s21 }
   0x5   :  { %s4294_s24 = scalar_lea.hbm %s4584_s1, 36864 }
   0x6   :  { %p4295_p0 = scmp.ne.s32.totalorder %s4584_s1, %s4294_s24  ;;  %p4298_p1 = scmp.lt.u32.totalorder %s4294_s24, %s4584_s1 }
   0x8   :  { %p4300_p2 = pnand %p4298_p1, %p4295_p0 }
   0xa   :  { %4303 = shalt.err (!%p4300_p2)
}
   0xb   :  { %s4304_s29 = scalar_lea.vmem %s32_s19, 36864  ;;  %p4309_p4 = scmp.lt.s32.totalorder %s32_s19, %s32_s19 }
   0xc   :  { %p4305_p3 = scmp.ne.s32.totalorder %s32_s19, %s4304_s29  ;;  %p4310_p5 = scmp.lt.s32.totalorder %s4304_s29, %s4304_s29 }
   0xe   :  { %p4311_p6 = por %p4310_p5, %p4309_p4 }
  0x10   :  { %p4312_p7 = pnand %p4311_p6, %p4305_p3 }
  0x12   :  { %4315 = shalt.err (!%p4312_p7)
}
  0x13   :  { %s4436_s30 = smov 384   ;;  %s4437_s6 = smov 24  }
  0x14   :  { %37 = dma.hbm_to_vmem [thread:$0]  %s4584_s1, 36864, %s32_s19, [#allocation6], %s4436_s30, %s4436_s30, %s4437_s6  }
  0x15   :  { %s4316_s11 = scalar_lea.hbm %s4586_s3, 16 }
  0x16   :  { %p4317_p8 = scmp.ne.s32.totalorder %s4586_s3, %s4316_s11  ;;  %p4320_p9 = scmp.lt.u32.totalorder %s4316_s11, %s4586_s3 }
  0x18   :  { %p4322_p10 = pnand %p4320_p9, %p4317_p8 }
  0x1a   :  { %4325 = shalt.err (!%p4322_p10)
}
  0x1b   :  { %s4326_s16 = scalar_lea.vmem %s4477_s21, 16  ;;  %s4330_s1 = scalar_lea.vmem %s4477_s21, 32 }
  0x1c   :  { %p4327_p11 = scmp.ne.s32.totalorder %s4477_s21, %s4326_s16  ;;  %p4331_p12 = scmp.lt.s32.totalorder %s4477_s21, %s4477_s21 }
  0x1d   :  { %p4332_p13 = scmp.lt.s32.totalorder %s4330_s1, %s4326_s16 }
  0x1f   :  { %p4333_p0 = por %p4332_p13, %p4331_p12 }
  0x21   :  { %p4334_p1 = pnand %p4333_p0, %p4327_p11 }
  0x23   :  { %4337 = shalt.err (!%p4334_p1)
}
  0x24   :  { %59 = dma.hbm_to_vmem [thread:$0]  %s4586_s3, 16, %s4477_s21, [#allocation9]  }
  0x25   :  { %s4438_s19 = smov [#allocation2]   ;;  %s4439_s22 = smov [#allocation7]  }
  0x26   :  { %s19_s20 = sshll.u32 %s4438_s19, 4  ;;  %s43_s23 = sshll.u32 %s4439_s22, 4  ;;  %s20_s20 = int_to_ptr.vmem [resolvable:$true] %s19_s20  ;;  %s4512_s23 = int_to_ptr.vmem [resolvable:$true] %s43_s23 }
  0x27   :  { %s4338_s26 = scalar_lea.hbm %s4583_s0, 768 }
  0x28   :  { %p4339_p2 = scmp.ne.s32.totalorder %s4583_s0, %s4338_s26  ;;  %p4342_p3 = scmp.lt.u32.totalorder %s4338_s26, %s4583_s0 }
  0x2a   :  { %p4344_p4 = pnand %p4342_p3, %p4339_p2 }
  0x2c   :  { %4347 = shalt.err (!%p4344_p4)
}
  0x2d   :  { %s4348_s3 = scalar_lea.vmem %s20_s20, 768  ;;  %p4353_p6 = scmp.lt.s32.totalorder %s20_s20, %s20_s20 }
  0x2e   :  { %p4349_p5 = scmp.ne.s32.totalorder %s20_s20, %s4348_s3  ;;  %p4354_p7 = scmp.lt.s32.totalorder %s4348_s3, %s4348_s3 }
  0x30   :  { %p4355_p8 = por %p4354_p7, %p4353_p6 }
  0x32   :  { %p4356_p9 = pnand %p4355_p8, %p4349_p5 }
  0x34   :  { %4359 = shalt.err (!%p4356_p9)
}
  0x35   :  { %25 = dma.hbm_to_vmem [thread:$0]  %s4583_s0, 768, %s20_s20, [#allocation3], %s4436_s30, %s4436_s30, %s4437_s6  }
  0x36   :  { %s4360_s11 = scalar_lea.hbm %s4585_s2, 6144 }
  0x37   :  { %p4361_p10 = scmp.ne.s32.totalorder %s4585_s2, %s4360_s11  ;;  %p4364_p11 = scmp.lt.u32.totalorder %s4360_s11, %s4585_s2 }
  0x39   :  { %p4366_p12 = pnand %p4364_p11, %p4361_p10 }
  0x3b   :  { %4369 = shalt.err (!%p4366_p12)
}
  0x3c   :  { %s4370_s16 = scalar_lea.vmem %s4512_s23, 6144  ;;  %p4375_p0 = scmp.lt.s32.totalorder %s4512_s23, %s4512_s23 }
  0x3d   :  { %p4371_p13 = scmp.ne.s32.totalorder %s4512_s23, %s4370_s16  ;;  %p4376_p1 = scmp.lt.s32.totalorder %s4370_s16, %s4370_s16 }
  0x3f   :  { %p4377_p2 = por %p4376_p1, %p4375_p0 }
  0x41   :  { %p4378_p3 = pnand %p4377_p2, %p4371_p13 }
  0x43   :  { %4381 = shalt.err (!%p4378_p3)
}
  0x44   :  { %s4440_s0 = smov 64   ;;  %s4441_s1 = smov 4  }
  0x45   :  { %49 = dma.hbm_to_vmem [thread:$0]  %s4585_s2, 6144, %s4512_s23, [#allocation6], %s4440_s0, %s4440_s0, %s4441_s1  }
  0x46   :  { %s4442_s19 = smov [#allocation10]   ;;  %s4382_s25 = scalar_lea.hbm %s4587_s4, 6144 }
  0x47   :  { %s65_s20 = sshll.u32 %s4442_s19, 4  ;;  %p4383_p4 = scmp.ne.s32.totalorder %s4587_s4, %s4382_s25  ;;  %s66_s20 = int_to_ptr.vmem [resolvable:$true] %s65_s20 }
  0x48   :  { %p4386_p5 = scmp.lt.u32.totalorder %s4382_s25, %s4587_s4 }
  0x4a   :  { %p4388_p6 = pnand %p4386_p5, %p4383_p4 }
  0x4c   :  { %4391 = shalt.err (!%p4388_p6)
}
  0x4d   :  { %s4392_s7 = scalar_lea.vmem %s66_s20, 6144  ;;  %p4397_p8 = scmp.lt.s32.totalorder %s66_s20, %s66_s20 }
  0x4e   :  { %p4393_p7 = scmp.ne.s32.totalorder %s66_s20, %s4392_s7  ;;  %p4398_p9 = scmp.lt.s32.totalorder %s4392_s7, %s4392_s7 }
  0x50   :  { %p4399_p10 = por %p4398_p9, %p4397_p8 }
  0x52   :  { %p4400_p11 = pnand %p4399_p10, %p4393_p7 }
  0x54   :  { %4403 = shalt.err (!%p4400_p11)
}
  0x55   :  { %71 = dma.hbm_to_vmem [thread:$0]  %s4587_s4, 6144, %s66_s20, [#allocation9], %s4436_s30, %s4436_s30, %s4437_s6  }
  0x56   :  { %4426 = dma.done.wait [#allocation3], 768  }
  0x57   :  { %4427 = vsyncadd [#allocation3], 4294966528 }
  0x58   :  { %4428 = dma.done.wait [#allocation6], 43008  }
  0x59   :  { %4429 = vsyncadd [#allocation6], 4294924288 }
  0x5a   :  { %4430 = dma.done.wait [#allocation9], 6160  }
  0x5b   :  { %4431 = vsyncadd [#allocation9], 4294961136  ;;  %v3720_v0 = vld [vmem:[#allocation5 + $0x4] ss:$24 sps:$4 sm:$0xff]   ;;  %v3722_v1 = vld [vmem:[#allocation5] ss:$24 sps:$4 sm:$0xff]  }
  0x5c   :  { %1852 = vmatprep.subr.bf16.mxu0 %v3720_v0  ;;  %v3723_v2 = vld [vmem:[#allocation5 + $0x34] ss:$24 sps:$4 sm:$0xff]   ;;  %v3725_v3 = vld [vmem:[#allocation5 + $0x30] ss:$24 sps:$4 sm:$0xff]   ;;  %v3726_v4 = vld [vmem:[#allocation5 + $0x64] ss:$24 sps:$4 sm:$0xff]  }
  0x5d   :  { %1853 = vmatpush1.bf16.msra.mxu0 %v3722_v1  ;;  %v3728_v5 = vld [vmem:[#allocation5 + $0x60] ss:$24 sps:$4 sm:$0xff]   ;;  %v3729_v6 = vld [vmem:[#allocation5 + $0x94] ss:$24 sps:$4 sm:$0xff]   ;;  %v3731_v7 = vld [vmem:[#allocation5 + $0x90] ss:$24 sps:$4 sm:$0xff]  }
  0x5e   :  { %1854 = vmatprep.subr.bf16.mxu0 %v3723_v2  ;;  %v3744_v8 = vld [vmem:[#allocation5 + $0xc] ss:$24 sps:$4 sm:$0xff]   ;;  %v3748_v10 = vld [vmem:[#allocation5 + $0x8] ss:$24 sps:$4 sm:$0xff]   ;;  %v3750_v11 = vld [vmem:[#allocation5 + $0x3c] ss:$24 sps:$4 sm:$0xff]  }
  0x5f   :  { %v3732_v9 = vld [vmem:[#allocation5 + $0xc4] ss:$24 sps:$4 sm:$0xff]   ;;  %1981 = vmatprep.subr.bf16.mxu1 %v3744_v8  ;;  %v3734_v12 = vld [vmem:[#allocation5 + $0xc0] ss:$24 sps:$4 sm:$0xff]   ;;  %v3735_v13 = vld [vmem:[#allocation5 + $0xf4] ss:$24 sps:$4 sm:$0xff]  }
  0x60   :  { %1982 = vmatpush1.bf16.msra.mxu1 %v3748_v10  ;;  %v3754_v14 = vld [vmem:[#allocation5 + $0x38] ss:$24 sps:$4 sm:$0xff]   ;;  %v3756_v15 = vld [vmem:[#allocation5 + $0x6c] ss:$24 sps:$4 sm:$0xff]   ;;  %v3760_v17 = vld [vmem:[#allocation5 + $0x68] ss:$24 sps:$4 sm:$0xff]  }
  0x61   :  { %1855 = vmatpush1.bf16.msra.mxu0 %v3725_v3  ;;  %1983 = vmatprep.subr.bf16.mxu1 %v3750_v11  ;;  %v3737_v16 = vld [vmem:[#allocation5 + $0xf0] ss:$24 sps:$4 sm:$0xff]   ;;  %v3762_v18 = vld [vmem:[#allocation5 + $0x9c] ss:$24 sps:$4 sm:$0xff]   ;;  %v3740_v21 = vld [vmem:[#allocation5 + $0x120] ss:$24 sps:$4 sm:$0xff]  }
  0x62   :  { %1856 = vmatprep.subr.bf16.mxu0 %v3726_v4  ;;  %v3738_v19 = vld [vmem:[#allocation5 + $0x124] ss:$24 sps:$4 sm:$0xff]   ;;  %v3766_v20 = vld [vmem:[#allocation5 + $0x98] ss:$24 sps:$4 sm:$0xff]   ;;  %v3741_v23 = vld [vmem:[#allocation5 + $0x154] ss:$24 sps:$4 sm:$0xff]  }
  0x63   :  { %v3768_v22 = vld [vmem:[#allocation5 + $0xcc] ss:$24 sps:$4 sm:$0xff]   ;;  %v3743_v24 = vld [vmem:[#allocation5 + $0x150] ss:$24 sps:$4 sm:$0xff]   ;;  %v3774_v26 = vld [vmem:[#allocation5 + $0xfc] ss:$24 sps:$4 sm:$0xff]  }
  0x64   :  { %1984 = vmatpush1.bf16.msra.mxu1 %v3754_v14  ;;  %v3772_v25 = vld [vmem:[#allocation5 + $0xc8] ss:$24 sps:$4 sm:$0xff]   ;;  %v3746_v27 = vld [vmem:[#allocation5 + $0x184] ss:$24 sps:$4 sm:$0xff]   ;;  %v3778_v28 = vld [vmem:[#allocation5 + $0xf8] ss:$24 sps:$4 sm:$0xff]  }
  0x65   :  { %1857 = vmatpush1.bf16.msra.mxu0 %v3728_v5  ;;  %1985 = vmatprep.subr.bf16.mxu1 %v3756_v15  ;;  %v3749_v29 = vld [vmem:[#allocation5 + $0x180] ss:$24 sps:$4 sm:$0xff]   ;;  %v3780_v30 = vld [vmem:[#allocation5 + $0x12c] ss:$24 sps:$4 sm:$0xff]   ;;  %v3755_v34 = vld [vmem:[#allocation5 + $0x1b0] ss:$24 sps:$4 sm:$0xff]  }
  0x66   :  { %1858 = vmatprep.subr.bf16.mxu0 %v3729_v6  ;;  %v3752_v31 = vld [vmem:[#allocation5 + $0x1b4] ss:$24 sps:$4 sm:$0xff]   ;;  %v3784_v33 = vld [vmem:[#allocation5 + $0x128] ss:$24 sps:$4 sm:$0xff]   ;;  %v3758_v36 = vld [vmem:[#allocation5 + $0x1e4] ss:$24 sps:$4 sm:$0xff]  }
  0x67   :  { %v3794_v32 = vld [vmem:[#allocation2 + $0x4] ss:$24 sps:$4 sm:$0xff]   ;;  %v3761_v37 = vld [vmem:[#allocation5 + $0x1e0] ss:$24 sps:$4 sm:$0xff]   ;;  %v3767_v42 = vld [vmem:[#allocation5 + $0x210] ss:$24 sps:$4 sm:$0xff]  }
  0x68   :  { %1986 = vmatpush1.bf16.msra.mxu1 %v3760_v17  ;;  %v3786_v35 = vld [vmem:[#allocation5 + $0x15c] ss:$24 sps:$4 sm:$0xff]   ;;  %1884 = vmatprep.mubr.bf16.mxu0 %v3794_v32  ;;  %v3790_v38 = vld [vmem:[#allocation5 + $0x158] ss:$24 sps:$4 sm:$0xff]   ;;  %v3792_v39 = vld [vmem:[#allocation5 + $0x18c] ss:$24 sps:$4 sm:$0xff]  }
  0x69   :  { %1859 = vmatpush1.bf16.msra.mxu0 %v3731_v7  ;;  %1987 = vmatprep.subr.bf16.mxu1 %v3762_v18  ;;  %v3764_v40 = vld [vmem:[#allocation5 + $0x214] ss:$24 sps:$4 sm:$0xff]   ;;  %v3799_v41 = vld [vmem:[#allocation5 + $0x188] ss:$24 sps:$4 sm:$0xff]   ;;  %v3770_v44 = vld [vmem:[#allocation5 + $0x244] ss:$24 sps:$4 sm:$0xff]  }
  0x6a   :  { %1860 = vmatprep.subr.bf16.mxu0 %v3732_v9  ;;  %2013 = vmatprep.mubr.bf16.mxu1 %v3794_v32  ;;  %v3801_v43 = vld [vmem:[#allocation5 + $0x1bc] ss:$24 sps:$4 sm:$0xff]   ;;  %v3773_v45 = vld [vmem:[#allocation5 + $0x240] ss:$24 sps:$4 sm:$0xff]   ;;  %v3807_v47 = vld [vmem:[#allocation5 + $0x1ec] ss:$24 sps:$4 sm:$0xff]  }
  0x6b   :  { %v3806_v46 = vld [vmem:[#allocation5 + $0x1b8] ss:$24 sps:$4 sm:$0xff]   ;;  %v3776_v48 = vld [vmem:[#allocation5 + $0x274] ss:$24 sps:$4 sm:$0xff]   ;;  %v3812_v49 = vld [vmem:[#allocation5 + $0x1e8] ss:$24 sps:$4 sm:$0xff]  }
  0x6c   :  { %1988 = vmatpush1.bf16.msra.mxu1 %v3766_v20  ;;  %v3779_v50 = vld [vmem:[#allocation5 + $0x270] ss:$24 sps:$4 sm:$0xff]   ;;  %v3813_v51 = vld [vmem:[#allocation5 + $0x21c] ss:$24 sps:$4 sm:$0xff]   ;;  %v3785_v54 = vld [vmem:[#allocation5 + $0x2a0] ss:$24 sps:$4 sm:$0xff]  }
  0x6d   :  { %1861 = vmatpush1.bf16.msra.mxu0 %v3734_v12  ;;  %1989 = vmatprep.subr.bf16.mxu1 %v3768_v22  ;;  %v3782_v52 = vld [vmem:[#allocation5 + $0x2a4] ss:$24 sps:$4 sm:$0xff]   ;;  %v3818_v53 = vld [vmem:[#allocation5 + $0x218] ss:$24 sps:$4 sm:$0xff]   ;;  %v3788_v56 = vld [vmem:[#allocation5 + $0x2d4] ss:$24 sps:$4 sm:$0xff]  }
  0x6e   :  { %1862 = vmatprep.subr.bf16.mxu0 %v3735_v13  ;;  %v3819_v55 = vld [vmem:[#allocation5 + $0x24c] ss:$24 sps:$4 sm:$0xff]   ;;  %v3824_v57 = vld [vmem:[#allocation5 + $0x248] ss:$24 sps:$4 sm:$0xff]   ;;  %v3825_v59 = vld [vmem:[#allocation5 + $0x27c] ss:$24 sps:$4 sm:$0xff]  }
  0x6f   :  { %v3791_v58 = vld [vmem:[#allocation5 + $0x2d0] ss:$24 sps:$4 sm:$0xff]   ;;  %v3798_v60 = vld [vmem:[#allocation5 + $0x304] ss:$24 sps:$4 sm:$0xff]   ;;  %v3796_v63 = vld [vmem:[#allocation5 + $0x300] ss:$24 sps:$4 sm:$0xff]  }
  0x70   :  { %1990 = vmatpush1.bf16.msra.mxu1 %v3772_v25  ;;  %v3800_v61 = vld [vmem:[#allocation2] ss:$24 sps:$4 sm:$0xff]   ;;  %v3831_v0 = vld [vmem:[#allocation5 + $0x2ac] ss:$24 sps:$4 sm:$0xff]   ;;  %v3837_v4 = vld [vmem:[#allocation5 + $0x2dc] ss:$24 sps:$4 sm:$0xff]  }
  0x71   :  { %1863 = vmatpush1.bf16.msra.mxu0 %v3737_v16  ;;  %1991 = vmatprep.subr.bf16.mxu1 %v3774_v26  ;;  %v3830_v62 = vld [vmem:[#allocation5 + $0x278] ss:$24 sps:$4 sm:$0xff]   ;;  %v3805_v1 = vld [vmem:[#allocation5 + $0x334] ss:$24 sps:$4 sm:$0xff]   ;;  %v3836_v2 = vld [vmem:[#allocation5 + $0x2a8] ss:$24 sps:$4 sm:$0xff]  }
  0x72   :  { %1864 = vmatprep.subr.bf16.mxu0 %v3738_v19  ;;  %v3803_v3 = vld [vmem:[#allocation5 + $0x330] ss:$24 sps:$4 sm:$0xff]   ;;  %v3811_v5 = vld [vmem:[#allocation5 + $0x364] ss:$24 sps:$4 sm:$0xff]   ;;  %v3809_v7 = vld [vmem:[#allocation5 + $0x360] ss:$24 sps:$4 sm:$0xff]  }
  0x73   :  { %v3842_v6 = vld [vmem:[#allocation5 + $0x2d8] ss:$24 sps:$4 sm:$0xff]   ;;  %v3845_v8 = vld [vmem:[#allocation5 + $0x30c] ss:$24 sps:$4 sm:$0xff]   ;;  %v3843_v10 = vld [vmem:[#allocation5 + $0x308] ss:$24 sps:$4 sm:$0xff]  }
  0x74   :  { %1992 = vmatpush1.bf16.msra.mxu1 %v3778_v28  ;;  %v3817_v9 = vld [vmem:[#allocation5 + $0x394] ss:$24 sps:$4 sm:$0xff]   ;;  %v3815_v11 = vld [vmem:[#allocation5 + $0x390] ss:$24 sps:$4 sm:$0xff]   ;;  %v3823_v13 = vld [vmem:[#allocation5 + $0x3c4] ss:$24 sps:$4 sm:$0xff]  }
  0x75   :  { %1865 = vmatpush1.bf16.msra.mxu0 %v3740_v21  ;;  %1993 = vmatprep.subr.bf16.mxu1 %v3780_v30  ;;  %v3851_v12 = vld [vmem:[#allocation5 + $0x33c] ss:$24 sps:$4 sm:$0xff]   ;;  %v3849_v14 = vld [vmem:[#allocation5 + $0x338] ss:$24 sps:$4 sm:$0xff]   ;;  %v3857_v17 = vld [vmem:[#allocation5 + $0x36c] ss:$24 sps:$4 sm:$0xff]  }
  0x76   :  { %1866 = vmatprep.subr.bf16.mxu0 %v3741_v23  ;;  %v3896_v15 = vld [vmem:[#allocation2 + $0xc] ss:$24 sps:$4 sm:$0xff]   ;;  %v3821_v16 = vld [vmem:[#allocation5 + $0x3c0] ss:$24 sps:$4 sm:$0xff]   ;;  %v3827_v20 = vld [vmem:[#allocation5 + $0x3f0] ss:$24 sps:$4 sm:$0xff]  }
  0x77   :  { %v3829_v18 = vld [vmem:[#allocation5 + $0x3f4] ss:$24 sps:$4 sm:$0xff]   ;;  %v3855_v19 = vld [vmem:[#allocation5 + $0x368] ss:$24 sps:$4 sm:$0xff]   ;;  %v3835_v22 = vld [vmem:[#allocation5 + $0x424] ss:$24 sps:$4 sm:$0xff]  }
  0x78   :  { %1994 = vmatpush1.bf16.msra.mxu1 %v3784_v33  ;;  %v3863_v21 = vld [vmem:[#allocation5 + $0x39c] ss:$24 sps:$4 sm:$0xff]   ;;  %v3861_v23 = vld [vmem:[#allocation5 + $0x398] ss:$24 sps:$4 sm:$0xff]   ;;  %v3869_v25 = vld [vmem:[#allocation5 + $0x3cc] ss:$24 sps:$4 sm:$0xff]  }
  0x79   :  { %1867 = vmatpush1.bf16.msra.mxu0 %v3743_v24  ;;  %1995 = vmatprep.subr.bf16.mxu1 %v3786_v35  ;;  %v3833_v24 = vld [vmem:[#allocation5 + $0x420] ss:$24 sps:$4 sm:$0xff]   ;;  %v3841_v26 = vld [vmem:[#allocation5 + $0x454] ss:$24 sps:$4 sm:$0xff]   ;;  %v3839_v28 = vld [vmem:[#allocation5 + $0x450] ss:$24 sps:$4 sm:$0xff]  }
  0x7a   :  { %1868 = vmatprep.subr.bf16.mxu0 %v3746_v27  ;;  %v3867_v27 = vld [vmem:[#allocation5 + $0x3c8] ss:$24 sps:$4 sm:$0xff]   ;;  %v3848_v30 = vld [vmem:[#allocation5 + $0x484] ss:$24 sps:$4 sm:$0xff]   ;;  %s4444_s4 = smov [#allocation11]  }
  0x7b   :  { %v3846_v32 = vld [vmem:[#allocation5 + $0x480] ss:$24 sps:$4 sm:$0xff]   ;;  %v3881_v33 = vld [vmem:[#allocation5 + $0x42c] ss:$24 sps:$4 sm:$0xff]   ;;  %s3212_s30 = sshll.u32 %s4444_s4, 4  ;;  %s3213_s30 = int_to_ptr.vmem [resolvable:$true] %s3212_s30 }
  0x7c   :  { %1996 = vmatpush1.bf16.msra.mxu1 %v3790_v38  ;;  %v3879_v35 = vld [vmem:[#allocation5 + $0x428] ss:$24 sps:$4 sm:$0xff]   ;;  %v3860_v38 = vld [vmem:[#allocation5 + $0x4e4] ss:$24 sps:$4 sm:$0xff]   ;;  %s4404_s6 = scalar_lea.vmem %s3213_s30, 1536  ;;  %p4409_p13 = scmp.lt.s32.totalorder %s3213_s30, %s3213_s30 }
  0x7d   :  { %1869 = vmatpush1.bf16.msra.mxu0 %v3749_v29  ;;  %1997 = vmatprep.subr.bf16.mxu1 %v3792_v39  ;;  %v3875_v29 = vld [vmem:[#allocation5 + $0x3fc] ss:$24 sps:$4 sm:$0xff]   ;;  %v3885_v39 = vld [vmem:[#allocation5 + $0x458] ss:$24 sps:$4 sm:$0xff]   ;;  %p4405_p12 = scmp.ne.s32.totalorder %s3213_s30, %s4404_s6  ;;  %p4410_p0 = scmp.lt.s32.totalorder %s4404_s6, %s4404_s6 }
  0x7e   :  { %1870 = vmatprep.subr.bf16.mxu0 %v3752_v31  ;;  %v3873_v31 = vld [vmem:[#allocation5 + $0x3f8] ss:$24 sps:$4 sm:$0xff]  }
  0x7f   :  { %p4411_p1 = por %p4410_p0, %p4409_p13 }
  0x80   :  { %1998 = vmatpush1.bf16.msra.mxu1 %v3799_v41  ;;  %v3893_v41 = vld [vmem:[#allocation5 + $0x48c] ss:$24 sps:$4 sm:$0xff]  }
  0x81   :  { %1871 = vmatpush1.bf16.msra.mxu0 %v3755_v34  ;;  %1999 = vmatprep.subr.bf16.mxu1 %v3801_v43  ;;  %v3854_v34 = vld [vmem:[#allocation5 + $0x4b4] ss:$24 sps:$4 sm:$0xff]   ;;  %v3891_v43 = vld [vmem:[#allocation5 + $0x488] ss:$24 sps:$4 sm:$0xff]   ;;  %p4412_p2 = pnand %p4411_p1, %p4405_p12 }
  0x82   :  { %1872 = vmatprep.subr.bf16.mxu0 %v3758_v36  ;;  %v3852_v36 = vld [vmem:[#allocation5 + $0x4b0] ss:$24 sps:$4 sm:$0xff]  }
  0x84   :  { %2000 = vmatpush1.bf16.msra.mxu1 %v3806_v46  ;;  %v3872_v46 = vld [vmem:[#allocation5 + $0x544] ss:$24 sps:$4 sm:$0xff]  }
  0x85   :  { %1873 = vmatpush1.bf16.msra.mxu0 %v3761_v37  ;;  %2001 = vmatprep.subr.bf16.mxu1 %v3807_v47  ;;  %v3887_v37 = vld [vmem:[#allocation5 + $0x45c] ss:$24 sps:$4 sm:$0xff]   ;;  %v3900_v47 = vld [vmem:[#allocation5 + $0x4b8] ss:$24 sps:$4 sm:$0xff]  }
  0x86   :  { %1874 = vmatprep.subr.bf16.mxu0 %v3764_v40  ;;  %v3858_v40 = vld [vmem:[#allocation5 + $0x4e0] ss:$24 sps:$4 sm:$0xff]  }
  0x88   :  { %2002 = vmatpush1.bf16.msra.mxu1 %v3812_v49  ;;  %v3908_v49 = vld [vmem:[#allocation5 + $0x4ec] ss:$24 sps:$4 sm:$0xff]  }
  0x89   :  { %1875 = vmatpush1.bf16.msra.mxu0 %v3767_v42  ;;  %2003 = vmatprep.subr.bf16.mxu1 %v3813_v51  ;;  %v3866_v42 = vld [vmem:[#allocation5 + $0x514] ss:$24 sps:$4 sm:$0xff]   ;;  %v3906_v51 = vld [vmem:[#allocation5 + $0x4e8] ss:$24 sps:$4 sm:$0xff]  }
  0x8a   :  { %1876 = vmatprep.subr.bf16.mxu0 %v3770_v44  ;;  %v3864_v44 = vld [vmem:[#allocation5 + $0x510] ss:$24 sps:$4 sm:$0xff]  }
  0x8c   :  { %2004 = vmatpush1.bf16.msra.mxu1 %v3818_v53  ;;  %v3914_v53 = vld [vmem:[#allocation5 + $0x51c] ss:$24 sps:$4 sm:$0xff]  }
  0x8d   :  { %1877 = vmatpush1.bf16.msra.mxu0 %v3773_v45  ;;  %2005 = vmatprep.subr.bf16.mxu1 %v3819_v55  ;;  %v3902_v45 = vld [vmem:[#allocation5 + $0x4bc] ss:$24 sps:$4 sm:$0xff]   ;;  %v3912_v55 = vld [vmem:[#allocation5 + $0x518] ss:$24 sps:$4 sm:$0xff]  }
  0x8e   :  { %1878 = vmatprep.subr.bf16.mxu0 %v3776_v48  ;;  %v3870_v48 = vld [vmem:[#allocation5 + $0x540] ss:$24 sps:$4 sm:$0xff]  }
  0x90   :  { %2006 = vmatpush1.bf16.msra.mxu1 %v3824_v57  ;;  %v3920_v57 = vld [vmem:[#allocation5 + $0x54c] ss:$24 sps:$4 sm:$0xff]  }
  0x91   :  { %1879 = vmatpush1.bf16.msra.mxu0 %v3779_v50  ;;  %2007 = vmatprep.subr.bf16.mxu1 %v3825_v59  ;;  %v3878_v50 = vld [vmem:[#allocation5 + $0x574] ss:$24 sps:$4 sm:$0xff]   ;;  %v3918_v59 = vld [vmem:[#allocation5 + $0x548] ss:$24 sps:$4 sm:$0xff]  }
  0x92   :  { %1880 = vmatprep.subr.bf16.mxu0 %v3782_v52  ;;  %v3876_v52 = vld [vmem:[#allocation5 + $0x570] ss:$24 sps:$4 sm:$0xff]  }
  0x94   :  { %2008 = vmatpush1.bf16.msra.mxu1 %v3830_v62  ;;  %v3899_v62 = vld [vmem:[#allocation5 + $0x604] ss:$24 sps:$4 sm:$0xff]  }
  0x95   :  { %1881 = vmatpush1.bf16.msra.mxu0 %v3785_v54  ;;  %2009 = vmatprep.subr.bf16.mxu1 %v3831_v0  ;;  %v3884_v54 = vld [vmem:[#allocation5 + $0x5a4] ss:$24 sps:$4 sm:$0xff]   ;;  %v3897_v0 = vld [vmem:[#allocation5 + $0x600] ss:$24 sps:$4 sm:$0xff]  }
  0x96   :  { %1882 = vmatprep.subr.bf16.mxu0 %v3788_v56  ;;  %v3882_v56 = vld [vmem:[#allocation5 + $0x5a0] ss:$24 sps:$4 sm:$0xff]  }
  0x98   :  { %2010 = vmatpush1.bf16.msra.mxu1 %v3836_v2  ;;  %v3905_v2 = vld [vmem:[#allocation5 + $0x634] ss:$24 sps:$4 sm:$0xff]  }
  0x99   :  { %1883 = vmatpush1.bf16.msra.mxu0 %v3791_v58  ;;  %2011 = vmatprep.subr.bf16.mxu1 %v3837_v4  ;;  %v3890_v58 = vld [vmem:[#allocation5 + $0x5d4] ss:$24 sps:$4 sm:$0xff]   ;;  %v3992_v4 = vld [vmem:[#allocation2 + $0x14] ss:$24 sps:$4 sm:$0xff]  }
  0x9a   :  { %1895 = vmatprep.subr.bf16.mxu0 %v3798_v60  ;;  %v3888_v60 = vld [vmem:[#allocation5 + $0x5d0] ss:$24 sps:$4 sm:$0xff]  }
  0x9c   :  { %1885 = vmatmul.mubr.bf16.vlgmr.msra.gmra.mrb[0].mxu0 %v3800_v61  ;;  %2012 = vmatpush1.bf16.msra.mxu1 %v3842_v6  ;;  %v3903_v6 = vld [vmem:[#allocation5 + $0x630] ss:$24 sps:$4 sm:$0xff]  }
  0x9d   :  { %1896 = vmatpush1.bf16.msra.mxu0 %v3796_v63  ;;  %2024 = vmatprep.subr.bf16.mxu1 %v3845_v8  ;;  %v3894_v63 = vld [vmem:[#allocation2 + $0x8] ss:$24 sps:$4 sm:$0xff]   ;;  %v3911_v8 = vld [vmem:[#allocation5 + $0x664] ss:$24 sps:$4 sm:$0xff]  }
  0x9e   :  { %1897 = vmatprep.subr.bf16.mxu0 %v3805_v1  ;;  %1927 = vmatprep.mubr.bf16.mxu0 %v3896_v15  ;;  %v3924_v1 = vld [vmem:[#allocation5 + $0x578] ss:$24 sps:$4 sm:$0xff]  }
  0x9f   :  { %2014 = vmatmul.mubr.bf16.vlgmr.msra.gmra.mrb[0].mxu1 %v3800_v61  ;;  %v3926_v61 = vld [vmem:[#allocation5 + $0x57c] ss:$24 sps:$4 sm:$0xff]  }
  0xa0   :  { %2025 = vmatpush1.bf16.msra.mxu1 %v3843_v10  ;;  %2056 = vmatprep.mubr.bf16.mxu1 %v3896_v15  ;;  %v3909_v10 = vld [vmem:[#allocation5 + $0x660] ss:$24 sps:$4 sm:$0xff]   ;;  %v3950_v15 = vld [vmem:[#allocation5 + $0x63c] ss:$24 sps:$4 sm:$0xff]  }
  0xa1   :  { %1898 = vmatpush1.bf16.msra.mxu0 %v3803_v3  ;;  %2026 = vmatprep.subr.bf16.mxu1 %v3851_v12  ;;  %v3932_v3 = vld [vmem:[#allocation5 + $0x5ac] ss:$24 sps:$4 sm:$0xff]  }
  0xa2   :  { %1899 = vmatprep.subr.bf16.mxu0 %v3811_v5  ;;  %v3930_v5 = vld [vmem:[#allocation5 + $0x5a8] ss:$24 sps:$4 sm:$0xff]   ;;  %v3917_v12 = vld [vmem:[#allocation5 + $0x694] ss:$24 sps:$4 sm:$0xff]  }
  0xa4   :  { %2027 = vmatpush1.bf16.msra.mxu1 %v3849_v14  ;;  %v3915_v14 = vld [vmem:[#allocation5 + $0x690] ss:$24 sps:$4 sm:$0xff]  }
  0xa5   :  { %1900 = vmatpush1.bf16.msra.mxu0 %v3809_v7  ;;  %2028 = vmatprep.subr.bf16.mxu1 %v3857_v17  ;;  %v3938_v7 = vld [vmem:[#allocation5 + $0x5dc] ss:$24 sps:$4 sm:$0xff]   ;;  %v3948_v17 = vld [vmem:[#allocation5 + $0x638] ss:$24 sps:$4 sm:$0xff]  }
  0xa6   :  { %1901 = vmatprep.subr.bf16.mxu0 %v3817_v9  ;;  %v3936_v9 = vld [vmem:[#allocation5 + $0x5d8] ss:$24 sps:$4 sm:$0xff]  }
  0xa8   :  { %2029 = vmatpush1.bf16.msra.mxu1 %v3855_v19  ;;  %v3956_v19 = vld [vmem:[#allocation5 + $0x66c] ss:$24 sps:$4 sm:$0xff]  }
  0xa9   :  { %1902 = vmatpush1.bf16.msra.mxu0 %v3815_v11  ;;  %2030 = vmatprep.subr.bf16.mxu1 %v3863_v21  ;;  %v3944_v11 = vld [vmem:[#allocation5 + $0x60c] ss:$24 sps:$4 sm:$0xff]   ;;  %v3954_v21 = vld [vmem:[#allocation5 + $0x668] ss:$24 sps:$4 sm:$0xff]  }
  0xaa   :  { %1903 = vmatprep.subr.bf16.mxu0 %v3823_v13  ;;  %v3942_v13 = vld [vmem:[#allocation5 + $0x608] ss:$24 sps:$4 sm:$0xff]  }
  0xac   :  { %2031 = vmatpush1.bf16.msra.mxu1 %v3861_v23  ;;  %v3962_v23 = vld [vmem:[#allocation5 + $0x69c] ss:$24 sps:$4 sm:$0xff]  }
  0xad   :  { %1904 = vmatpush1.bf16.msra.mxu0 %v3821_v16  ;;  %2032 = vmatprep.subr.bf16.mxu1 %v3869_v25  ;;  %v3923_v16 = vld [vmem:[#allocation5 + $0x6c4] ss:$24 sps:$4 sm:$0xff]   ;;  %v3960_v25 = vld [vmem:[#allocation5 + $0x698] ss:$24 sps:$4 sm:$0xff]  }
  0xae   :  { %1905 = vmatprep.subr.bf16.mxu0 %v3829_v18  ;;  %v3921_v18 = vld [vmem:[#allocation5 + $0x6c0] ss:$24 sps:$4 sm:$0xff]  }
  0xb0   :  { %2033 = vmatpush1.bf16.msra.mxu1 %v3867_v27  ;;  %v3968_v27 = vld [vmem:[#allocation5 + $0x6cc] ss:$24 sps:$4 sm:$0xff]  }
  0xb1   :  { %1906 = vmatpush1.bf16.msra.mxu0 %v3827_v20  ;;  %2034 = vmatprep.subr.bf16.mxu1 %v3875_v29  ;;  %v3929_v20 = vld [vmem:[#allocation5 + $0x6f4] ss:$24 sps:$4 sm:$0xff]   ;;  %v3966_v29 = vld [vmem:[#allocation5 + $0x6c8] ss:$24 sps:$4 sm:$0xff]  }
  0xb2   :  { %1907 = vmatprep.subr.bf16.mxu0 %v3835_v22  ;;  %v3927_v22 = vld [vmem:[#allocation5 + $0x6f0] ss:$24 sps:$4 sm:$0xff]  }
  0xb4   :  { %2035 = vmatpush1.bf16.msra.mxu1 %v3873_v31  ;;  %v3974_v31 = vld [vmem:[#allocation5 + $0x6fc] ss:$24 sps:$4 sm:$0xff]  }
  0xb5   :  { %1908 = vmatpush1.bf16.msra.mxu0 %v3833_v24  ;;  %2036 = vmatprep.subr.bf16.mxu1 %v3881_v33  ;;  %v3935_v24 = vld [vmem:[#allocation5 + $0x724] ss:$24 sps:$4 sm:$0xff]   ;;  %v3972_v33 = vld [vmem:[#allocation5 + $0x6f8] ss:$24 sps:$4 sm:$0xff]  }
  0xb6   :  { %1909 = vmatprep.subr.bf16.mxu0 %v3841_v26  ;;  %v3933_v26 = vld [vmem:[#allocation5 + $0x720] ss:$24 sps:$4 sm:$0xff]  }
  0xb8   :  { %2037 = vmatpush1.bf16.msra.mxu1 %v3879_v35  ;;  %v3980_v35 = vld [vmem:[#allocation5 + $0x72c] ss:$24 sps:$4 sm:$0xff]  }
  0xb9   :  { %1910 = vmatpush1.bf16.msra.mxu0 %v3839_v28  ;;  %2038 = vmatprep.subr.bf16.mxu1 %v3887_v37  ;;  %v3941_v28 = vld [vmem:[#allocation5 + $0x754] ss:$24 sps:$4 sm:$0xff]   ;;  %v3978_v37 = vld [vmem:[#allocation5 + $0x728] ss:$24 sps:$4 sm:$0xff]  }
  0xba   :  { %1911 = vmatprep.subr.bf16.mxu0 %v3848_v30  ;;  %v3939_v30 = vld [vmem:[#allocation5 + $0x750] ss:$24 sps:$4 sm:$0xff]  }
  0xbc   :  { %2039 = vmatpush1.bf16.msra.mxu1 %v3885_v39  ;;  %v3986_v39 = vld [vmem:[#allocation5 + $0x75c] ss:$24 sps:$4 sm:$0xff]  }
  0xbd   :  { %1912 = vmatpush1.bf16.msra.mxu0 %v3846_v32  ;;  %2040 = vmatprep.subr.bf16.mxu1 %v3893_v41  ;;  %v3947_v32 = vld [vmem:[#allocation5 + $0x784] ss:$24 sps:$4 sm:$0xff]   ;;  %v3957_v41 = vld [vmem:[#allocation5 + $0x7e0] ss:$24 sps:$4 sm:$0xff]  }
  0xbe   :  { %1913 = vmatprep.subr.bf16.mxu0 %v3854_v34  ;;  %v3945_v34 = vld [vmem:[#allocation5 + $0x780] ss:$24 sps:$4 sm:$0xff]  }
  0xc0   :  { %2041 = vmatpush1.bf16.msra.mxu1 %v3891_v43  ;;  %v3965_v43 = vld [vmem:[#allocation5 + $0x814] ss:$24 sps:$4 sm:$0xff]  }
  0xc1   :  { %1914 = vmatpush1.bf16.msra.mxu0 %v3852_v36  ;;  %2042 = vmatprep.subr.bf16.mxu1 %v3902_v45  ;;  %v3953_v36 = vld [vmem:[#allocation5 + $0x7b4] ss:$24 sps:$4 sm:$0xff]   ;;  %v3993_v45 = vld [vmem:[#allocation5 + $0x788] ss:$24 sps:$4 sm:$0xff]  }
  0xc2   :  { %1915 = vmatprep.subr.bf16.mxu0 %v3860_v38  ;;  %v3951_v38 = vld [vmem:[#allocation5 + $0x7b0] ss:$24 sps:$4 sm:$0xff]  }
  0xc4   :  { %2043 = vmatpush1.bf16.msra.mxu1 %v3900_v47  ;;  %v3971_v47 = vld [vmem:[#allocation5 + $0x844] ss:$24 sps:$4 sm:$0xff]  }
  0xc5   :  { %1916 = vmatpush1.bf16.msra.mxu0 %v3858_v40  ;;  %2044 = vmatprep.subr.bf16.mxu1 %v3908_v49  ;;  %v3959_v40 = vld [vmem:[#allocation5 + $0x7e4] ss:$24 sps:$4 sm:$0xff]   ;;  %v3999_v49 = vld [vmem:[#allocation5 + $0x7b8] ss:$24 sps:$4 sm:$0xff]  }
  0xc6   :  { %1917 = vmatprep.subr.bf16.mxu0 %v3866_v42  ;;  %v3984_v42 = vld [vmem:[#allocation5 + $0x758] ss:$24 sps:$4 sm:$0xff]  }
  0xc8   :  { %2045 = vmatpush1.bf16.msra.mxu1 %v3906_v51  ;;  %v3977_v51 = vld [vmem:[#allocation5 + $0x874] ss:$24 sps:$4 sm:$0xff]  }
  0xc9   :  { %1918 = vmatpush1.bf16.msra.mxu0 %v3864_v44  ;;  %2046 = vmatprep.subr.bf16.mxu1 %v3914_v53  ;;  %v3995_v44 = vld [vmem:[#allocation5 + $0x78c] ss:$24 sps:$4 sm:$0xff]   ;;  %v4005_v53 = vld [vmem:[#allocation5 + $0x7e8] ss:$24 sps:$4 sm:$0xff]  }
  0xca   :  { %1919 = vmatprep.subr.bf16.mxu0 %v3872_v46  ;;  %v3963_v46 = vld [vmem:[#allocation5 + $0x810] ss:$24 sps:$4 sm:$0xff]  }
  0xcc   :  { %2047 = vmatpush1.bf16.msra.mxu1 %v3912_v55  ;;  %v3983_v55 = vld [vmem:[#allocation5 + $0x8a4] ss:$24 sps:$4 sm:$0xff]  }
  0xcd   :  { %1920 = vmatpush1.bf16.msra.mxu0 %v3870_v48  ;;  %2048 = vmatprep.subr.bf16.mxu1 %v3920_v57  ;;  %v4001_v48 = vld [vmem:[#allocation5 + $0x7bc] ss:$24 sps:$4 sm:$0xff]   ;;  %v4011_v57 = vld [vmem:[#allocation5 + $0x818] ss:$24 sps:$4 sm:$0xff]  }
  0xce   :  { %1921 = vmatprep.subr.bf16.mxu0 %v3878_v50  ;;  %v3969_v50 = vld [vmem:[#allocation5 + $0x840] ss:$24 sps:$4 sm:$0xff]  }
  0xd0   :  { %2049 = vmatpush1.bf16.msra.mxu1 %v3918_v59  ;;  %v3989_v59 = vld [vmem:[#allocation5 + $0x8d4] ss:$24 sps:$4 sm:$0xff]  }
  0xd1   :  { %1922 = vmatpush1.bf16.msra.mxu0 %v3876_v52  ;;  %2050 = vmatprep.subr.bf16.mxu1 %v3926_v61  ;;  %v4007_v52 = vld [vmem:[#allocation5 + $0x7ec] ss:$24 sps:$4 sm:$0xff]   ;;  %v4017_v61 = vld [vmem:[#allocation5 + $0x848] ss:$24 sps:$4 sm:$0xff]  }
  0xd2   :  { %1923 = vmatprep.subr.bf16.mxu0 %v3884_v54  ;;  %v3975_v54 = vld [vmem:[#allocation5 + $0x870] ss:$24 sps:$4 sm:$0xff]  }
  0xd4   :  { %2051 = vmatpush1.bf16.msra.mxu1 %v3924_v1  ;;  %v4561_v1 = vld [vmem:[#allocation2 + $0x10] ss:$24 sps:$4 sm:$0xff]  }
  0xd5   :  { %1924 = vmatpush1.bf16.msra.mxu0 %v3882_v56  ;;  %2052 = vmatprep.subr.bf16.mxu1 %v3932_v3  ;;  %v4013_v56 = vld [vmem:[#allocation5 + $0x81c] ss:$24 sps:$4 sm:$0xff]   ;;  %v3996_v3 = vld [vmem:[#allocation5 + $0x10] ss:$24 sps:$4 sm:$0xff]  }
  0xd6   :  { %1925 = vmatprep.subr.bf16.mxu0 %v3890_v58  ;;  %v3981_v58 = vld [vmem:[#allocation5 + $0x8a0] ss:$24 sps:$4 sm:$0xff]  }
  0xd8   :  { %2053 = vmatpush1.bf16.msra.mxu1 %v3930_v5  ;;  %v4031_v5 = vld [vmem:[#allocation5 + $0x8ac] ss:$24 sps:$4 sm:$0xff]  }
  0xd9   :  { %1926 = vmatpush1.bf16.msra.mxu0 %v3888_v60  ;;  %2054 = vmatprep.subr.bf16.mxu1 %v3938_v7  ;;  %v4019_v60 = vld [vmem:[#allocation5 + $0x84c] ss:$24 sps:$4 sm:$0xff]   ;;  %v4002_v7 = vld [vmem:[#allocation5 + $0x40] ss:$24 sps:$4 sm:$0xff]  }
  0xda   :  { %1938 = vmatprep.subr.bf16.mxu0 %v3899_v62  ;;  %v3987_v62 = vld [vmem:[#allocation5 + $0x8d0] ss:$24 sps:$4 sm:$0xff]  }
  0xdc   :  { %1928 = vmatmul.mubr.bf16.vlgmr.msra.gmra.mrb[0].mxu0 %v3894_v63  ;;  %2055 = vmatpush1.bf16.msra.mxu1 %v3936_v9  ;;  %v4037_v9 = vld [vmem:[#allocation5 + $0x8dc] ss:$24 sps:$4 sm:$0xff]  }
  0xdd   :  { %1939 = vmatpush1.bf16.msra.mxu0 %v3897_v0  ;;  %1970 = vmatprep.mubr.bf16.mxu0 %v3992_v4  ;;  %v4025_v0 = vld [vmem:[#allocation5 + $0x87c] ss:$24 sps:$4 sm:$0xff]  }
  0xde   :  { %1940 = vmatprep.subr.bf16.mxu0 %v3905_v2  ;;  %2067 = vmatprep.subr.bf16.mxu1 %v3944_v11  ;;  %v4023_v2 = vld [vmem:[#allocation5 + $0x878] ss:$24 sps:$4 sm:$0xff]   ;;  %v4289_v11 = vld [vmem:[#allocation2 + $0x4] ss:$24 sps:$4 sm:$0xff]  }
  0xdf   :  { %2057 = vmatmul.mubr.bf16.vlgmr.msra.gmra.mrb[0].mxu1 %v3894_v63  ;;  %v3998_v63 = vld [vmem:[#allocation5 + $0x14] ss:$24 sps:$4 sm:$0xff]  }
  0xe0   :  { %2068 = vmatpush1.bf16.msra.mxu1 %v3942_v13  ;;  %2099 = vmatprep.mubr.bf16.mxu1 %v3992_v4  ;;  %v4004_v4 = vld [vmem:[#allocation5 + $0x44] ss:$24 sps:$4 sm:$0xff]  }
  0xe1   :  { %1941 = vmatpush1.bf16.msra.mxu0 %v3903_v6  ;;  %2069 = vmatprep.subr.bf16.mxu1 %v3950_v15  ;;  %v4029_v6 = vld [vmem:[#allocation5 + $0x8a8] ss:$24 sps:$4 sm:$0xff]   ;;  %v4016_v13 = vld [vmem:[#allocation5 + $0xa4] ss:$24 sps:$4 sm:$0xff]   ;;  %v4022_v15 = vld [vmem:[#allocation5 + $0xd4] ss:$24 sps:$4 sm:$0xff]  }
  0xe2   :  { %1942 = vmatprep.subr.bf16.mxu0 %v3911_v8  ;;  %v4010_v8 = vld [vmem:[#allocation5 + $0x74] ss:$24 sps:$4 sm:$0xff]  }
  0xe4   :  { %2070 = vmatpush1.bf16.msra.mxu1 %v3948_v17  ;;  %v4028_v17 = vld [vmem:[#allocation5 + $0x104] ss:$24 sps:$4 sm:$0xff]  }
  0xe5   :  { %1943 = vmatpush1.bf16.msra.mxu0 %v3909_v10  ;;  %2071 = vmatprep.subr.bf16.mxu1 %v3956_v19  ;;  %v4035_v10 = vld [vmem:[#allocation5 + $0x8d8] ss:$24 sps:$4 sm:$0xff]   ;;  %v4034_v19 = vld [vmem:[#allocation5 + $0x134] ss:$24 sps:$4 sm:$0xff]  }
  0xe6   :  { %1944 = vmatprep.subr.bf16.mxu0 %v3917_v12  ;;  %v4008_v12 = vld [vmem:[#allocation5 + $0x70] ss:$24 sps:$4 sm:$0xff]  }
  0xe8   :  { %2072 = vmatpush1.bf16.msra.mxu1 %v3954_v21  ;;  %v4040_v21 = vld [vmem:[#allocation5 + $0x164] ss:$24 sps:$4 sm:$0xff]  }
  0xe9   :  { %1945 = vmatpush1.bf16.msra.mxu0 %v3915_v14  ;;  %2073 = vmatprep.subr.bf16.mxu1 %v3962_v23  ;;  %v4014_v14 = vld [vmem:[#allocation5 + $0xa0] ss:$24 sps:$4 sm:$0xff]   ;;  %v4043_v23 = vld [vmem:[#allocation5 + $0x194] ss:$24 sps:$4 sm:$0xff]  }
  0xea   :  { %1946 = vmatprep.subr.bf16.mxu0 %v3923_v16  ;;  %v4020_v16 = vld [vmem:[#allocation5 + $0xd0] ss:$24 sps:$4 sm:$0xff]  }
  0xec   :  { %2074 = vmatpush1.bf16.msra.mxu1 %v3960_v25  ;;  %v4046_v25 = vld [vmem:[#allocation5 + $0x1c4] ss:$24 sps:$4 sm:$0xff]  }
  0xed   :  { %1947 = vmatpush1.bf16.msra.mxu0 %v3921_v18  ;;  %2075 = vmatprep.subr.bf16.mxu1 %v3968_v27  ;;  %v4026_v18 = vld [vmem:[#allocation5 + $0x100] ss:$24 sps:$4 sm:$0xff]   ;;  %v4049_v27 = vld [vmem:[#allocation5 + $0x1f4] ss:$24 sps:$4 sm:$0xff]  }
  0xee   :  { %1948 = vmatprep.subr.bf16.mxu0 %v3929_v20  ;;  %v4032_v20 = vld [vmem:[#allocation5 + $0x130] ss:$24 sps:$4 sm:$0xff]  }
  0xf0   :  { %2076 = vmatpush1.bf16.msra.mxu1 %v3966_v29  ;;  %v4052_v29 = vld [vmem:[#allocation5 + $0x224] ss:$24 sps:$4 sm:$0xff]  }
  0xf1   :  { %1949 = vmatpush1.bf16.msra.mxu0 %v3927_v22  ;;  %2077 = vmatprep.subr.bf16.mxu1 %v3974_v31  ;;  %v4038_v22 = vld [vmem:[#allocation5 + $0x160] ss:$24 sps:$4 sm:$0xff]   ;;  %v4055_v31 = vld [vmem:[#allocation5 + $0x254] ss:$24 sps:$4 sm:$0xff]  }
  0xf2   :  { %1950 = vmatprep.subr.bf16.mxu0 %v3935_v24  ;;  %v4041_v24 = vld [vmem:[#allocation5 + $0x190] ss:$24 sps:$4 sm:$0xff]  }
  0xf4   :  { %2078 = vmatpush1.bf16.msra.mxu1 %v3972_v33  ;;  %v4058_v33 = vld [vmem:[#allocation5 + $0x284] ss:$24 sps:$4 sm:$0xff]  }
  0xf5   :  { %1951 = vmatpush1.bf16.msra.mxu0 %v3933_v26  ;;  %2079 = vmatprep.subr.bf16.mxu1 %v3980_v35  ;;  %v4044_v26 = vld [vmem:[#allocation5 + $0x1c0] ss:$24 sps:$4 sm:$0xff]   ;;  %v4061_v35 = vld [vmem:[#allocation5 + $0x2b4] ss:$24 sps:$4 sm:$0xff]  }
  0xf6   :  { %1952 = vmatprep.subr.bf16.mxu0 %v3941_v28  ;;  %v4047_v28 = vld [vmem:[#allocation5 + $0x1f0] ss:$24 sps:$4 sm:$0xff]  }
  0xf8   :  { %2080 = vmatpush1.bf16.msra.mxu1 %v3978_v37  ;;  %v4064_v37 = vld [vmem:[#allocation5 + $0x2e4] ss:$24 sps:$4 sm:$0xff]  }
  0xf9   :  { %1953 = vmatpush1.bf16.msra.mxu0 %v3939_v30  ;;  %2081 = vmatprep.subr.bf16.mxu1 %v3986_v39  ;;  %v4050_v30 = vld [vmem:[#allocation5 + $0x220] ss:$24 sps:$4 sm:$0xff]  }
  0xfa   :  { %1954 = vmatprep.subr.bf16.mxu0 %v3947_v32  ;;  %v4053_v32 = vld [vmem:[#allocation5 + $0x250] ss:$24 sps:$4 sm:$0xff]   ;;  %v4159_v39 = vld [vmem:[#allocation7] sm:$0xff]  }
  0xfc   :  { %2082 = vmatpush1.bf16.msra.mxu1 %v3984_v42  ;;  %v4163_v42 = vld [vmem:[#allocation7 + $0x48] sm:$0xff]  }
  0xfd   :  { %1955 = vmatpush1.bf16.msra.mxu0 %v3945_v34  ;;  %2083 = vmatprep.subr.bf16.mxu1 %v3995_v44  ;;  %v4056_v34 = vld [vmem:[#allocation5 + $0x280] ss:$24 sps:$4 sm:$0xff]   ;;  %v4065_v44 = vld [vmem:[#allocation5 + $0x310] ss:$24 sps:$4 sm:$0xff]  }
  0xfe   :  { %1956 = vmatprep.subr.bf16.mxu0 %v3953_v36  ;;  %v4059_v36 = vld [vmem:[#allocation5 + $0x2b0] ss:$24 sps:$4 sm:$0xff]  }
 0x100   :  { %2084 = vmatpush1.bf16.msra.mxu1 %v3993_v45  ;;  %v4070_v45 = vld [vmem:[#allocation5 + $0x344] ss:$24 sps:$4 sm:$0xff]  }
 0x101   :  { %1957 = vmatpush1.bf16.msra.mxu0 %v3951_v38  ;;  %2085 = vmatprep.subr.bf16.mxu1 %v4001_v48  ;;  %v4158_v38 = vld [vmem:[#allocation7 + $0x40] sm:$0xff]   ;;  %v4166_v48 = vld [vmem:[#allocation7 + $0x10] sm:$0xff]  }
 0x102   :  { %1958 = vmatprep.subr.bf16.mxu0 %v3959_v40  ;;  %v4062_v40 = vld [vmem:[#allocation5 + $0x2e0] ss:$24 sps:$4 sm:$0xff]  }
 0x104   :  { %2086 = vmatpush1.bf16.msra.mxu1 %v3999_v49  ;;  %v4167_v49 = vld [vmem:[#allocation7 + $0x58] sm:$0xff]  }
 0x105   :  { %1959 = vmatpush1.bf16.msra.mxu0 %v3957_v41  ;;  %2087 = vmatprep.subr.bf16.mxu1 %v4007_v52  ;;  %v4067_v41 = vld [vmem:[#allocation5 + $0x314] ss:$24 sps:$4 sm:$0xff]  }
 0x106   :  { %1960 = vmatprep.subr.bf16.mxu0 %v3965_v43  ;;  %v4164_v43 = vld [vmem:[#allocation7 + $0x8] sm:$0xff]  }
 0x107   :  { %v4073_v52 = vld [vmem:[#allocation5 + $0x374] ss:$24 sps:$4 sm:$0xff]  }
 0x108   :  { %2088 = vmatpush1.bf16.msra.mxu1 %v4005_v53  ;;  %v4168_v53 = vld [vmem:[#allocation7 + $0x18] sm:$0xff]  }
 0x109   :  { %1961 = vmatpush1.bf16.msra.mxu0 %v3963_v46  ;;  %2089 = vmatprep.subr.bf16.mxu1 %v4013_v56  ;;  %v4165_v46 = vld [vmem:[#allocation7 + $0x50] sm:$0xff]   ;;  %v4076_v56 = vld [vmem:[#allocation5 + $0x3a4] ss:$24 sps:$4 sm:$0xff]  }
 0x10a   :  { %1962 = vmatprep.subr.bf16.mxu0 %v3971_v47  ;;  %v4290_v47 = vld [vmem:[#allocation2] ss:$24 sps:$4 sm:$0xff]  }
 0x10c   :  { %2090 = vmatpush1.bf16.msra.mxu1 %v4011_v57  ;;  %v4170_v57 = vld [vmem:[#allocation7 + $0x20] sm:$0xff]  }
 0x10d   :  { %1963 = vmatpush1.bf16.msra.mxu0 %v3969_v50  ;;  %2091 = vmatprep.subr.bf16.mxu1 %v4019_v60  ;;  %v4068_v50 = vld [vmem:[#allocation5 + $0x340] ss:$24 sps:$4 sm:$0xff]   ;;  %v4079_v60 = vld [vmem:[#allocation5 + $0x3d4] ss:$24 sps:$4 sm:$0xff]  }
 0x10e   :  { %1964 = vmatprep.subr.bf16.mxu0 %v3977_v51  ;;  %v4291_v51 = vld [vmem:[#allocation2 + $0xc] ss:$24 sps:$4 sm:$0xff]  }
 0x110   :  { %2092 = vmatpush1.bf16.msra.mxu1 %v4017_v61  ;;  %v4172_v61 = vld [vmem:[#allocation7 + $0x28] sm:$0xff]  }
 0x111   :  { %1965 = vmatpush1.bf16.msra.mxu0 %v3975_v54  ;;  %2093 = vmatprep.subr.bf16.mxu1 %v4025_v0  ;;  %v4169_v54 = vld [vmem:[#allocation7 + $0x60] sm:$0xff]  }
 0x112   :  { %1966 = vmatprep.subr.bf16.mxu0 %v3983_v55  ;;  %v4071_v55 = vld [vmem:[#allocation5 + $0x370] ss:$24 sps:$4 sm:$0xff]   ;;  %v4082_v0 = vld [vmem:[#allocation5 + $0x404] ss:$24 sps:$4 sm:$0xff]  }
 0x114   :  { %2094 = vmatpush1.bf16.msra.mxu1 %v4023_v2  ;;  %v4174_v2 = vld [vmem:[#allocation7 + $0x30] sm:$0xff]  }
 0x115   :  { %1967 = vmatpush1.bf16.msra.mxu0 %v3981_v58  ;;  %2095 = vmatprep.subr.bf16.mxu1 %v4031_v5  ;;  %v4171_v58 = vld [vmem:[#allocation7 + $0x68] sm:$0xff]   ;;  %v4175_v5 = vld [vmem:[#allocation7 + $0x78] sm:$0xff]  }
 0x116   :  { %1968 = vmatprep.subr.bf16.mxu0 %v3989_v59  ;;  %v4074_v59 = vld [vmem:[#allocation5 + $0x3a0] ss:$24 sps:$4 sm:$0xff]  }
 0x118   :  { %2096 = vmatpush1.bf16.msra.mxu1 %v4029_v6  ;;  %v4176_v6 = vld [vmem:[#allocation7 + $0x38] sm:$0xff]  }
 0x119   :  { %1969 = vmatpush1.bf16.msra.mxu0 %v3987_v62  ;;  %2097 = vmatprep.subr.bf16.mxu1 %v4037_v9  ;;  %v4173_v62 = vld [vmem:[#allocation7 + $0x70] sm:$0xff]   ;;  %v4177_v9 = vld [vmem:[#allocation7 + $0xc0] sm:$0xff]  }
 0x11a   :  { %2110 = vmatprep.subr.bf16.mxu0 %v3998_v63  ;;  %v4077_v63 = vld [vmem:[#allocation5 + $0x3d0] ss:$24 sps:$4 sm:$0xff]  }
 0x11c   :  { %1971 = vmatmul.mubr.bf16.vlgmr.msra.gmra.mrb[0].mxu0 %v4561_v1  ;;  %2098 = vmatpush1.bf16.msra.mxu1 %v4035_v10  ;;  %v4086_v10 = vld [vmem:[#allocation5 + $0x460] ss:$24 sps:$4 sm:$0xff]  }
 0x11d   :  { %2111 = vmatpush1.bf16.msra.mxu0 %v3996_v3  ;;  %2142 = vmatprep.mubr.bf16.mxu0 %v4289_v11  ;;  %v4080_v3 = vld [vmem:[#allocation5 + $0x400] ss:$24 sps:$4 sm:$0xff]   ;;  %v4091_v11 = vld [vmem:[#allocation5 + $0x494] ss:$24 sps:$4 sm:$0xff]  }
 0x11e   :  { %2112 = vmatprep.subr.bf16.mxu0 %v4004_v4  ;;  %3617 = vmatprep.subr.bf16.mxu1 %v4158_v38  ;;  %v4085_v4 = vld [vmem:[#allocation5 + $0x434] ss:$24 sps:$4 sm:$0xff]   ;;  %v4125_v38 = vld [vmem:[#allocation5 + $0x6d0] ss:$24 sps:$4 sm:$0xff]  }
 0x11f   :  { %2100 = vmatmul.mubr.bf16.vlgmr.msra.gmra.mrb[0].mxu1 %v4561_v1 }
 0x120   :  { %3618 = vmatpush3.bf16.msra.mxu1 %v4159_v39  ;;  %v4130_v39 = vld [vmem:[#allocation5 + $0x704] ss:$24 sps:$4 sm:$0xff]  }
 0x121   :  { %2113 = vmatpush1.bf16.msra.mxu0 %v4002_v7  ;;  %3619 = vmatprep.subr.bf16.mxu1 %v4163_v42  ;;  %v4083_v7 = vld [vmem:[#allocation5 + $0x430] ss:$24 sps:$4 sm:$0xff]  }
 0x122   :  { %2114 = vmatprep.subr.bf16.mxu0 %v4010_v8  ;;  %v4088_v8 = vld [vmem:[#allocation5 + $0x464] ss:$24 sps:$4 sm:$0xff]   ;;  %v4131_v42 = vld [vmem:[#allocation5 + $0x730] ss:$24 sps:$4 sm:$0xff]  }
 0x124   :  { %3620 = vmatpush3.bf16.msra.mxu1 %v4164_v43  ;;  %v4136_v43 = vld [vmem:[#allocation5 + $0x764] ss:$24 sps:$4 sm:$0xff]  }
 0x125   :  { %2115 = vmatpush1.bf16.msra.mxu0 %v4008_v12  ;;  %3621 = vmatprep.subr.bf16.mxu1 %v4165_v46  ;;  %v4089_v12 = vld [vmem:[#allocation5 + $0x490] ss:$24 sps:$4 sm:$0xff]  }
 0x126   :  { %2116 = vmatprep.subr.bf16.mxu0 %v4016_v13  ;;  %v4094_v13 = vld [vmem:[#allocation5 + $0x4c4] ss:$24 sps:$4 sm:$0xff]   ;;  %v4137_v46 = vld [vmem:[#allocation5 + $0x790] ss:$24 sps:$4 sm:$0xff]  }
 0x128   :  { %3622 = vmatpush3.bf16.msra.mxu1 %v4166_v48  ;;  %v4140_v48 = vld [vmem:[#allocation5 + $0x7c0] ss:$24 sps:$4 sm:$0xff]  }
 0x129   :  { %2117 = vmatpush1.bf16.msra.mxu0 %v4014_v14  ;;  %3623 = vmatprep.subr.bf16.mxu1 %v4167_v49  ;;  %v4092_v14 = vld [vmem:[#allocation5 + $0x4c0] ss:$24 sps:$4 sm:$0xff]   ;;  %v4145_v49 = vld [vmem:[#allocation5 + $0x7f4] ss:$24 sps:$4 sm:$0xff]  }
 0x12a   :  { %2118 = vmatprep.subr.bf16.mxu0 %v4022_v15  ;;  %v4097_v15 = vld [vmem:[#allocation5 + $0x4f4] ss:$24 sps:$4 sm:$0xff]  }
 0x12c   :  { %3624 = vmatpush3.bf16.msra.mxu1 %v4168_v53  ;;  %v4151_v53 = vld [vmem:[#allocation5 + $0x854] ss:$24 sps:$4 sm:$0xff]  }
 0x12d   :  { %2119 = vmatpush1.bf16.msra.mxu0 %v4020_v16  ;;  %3625 = vmatprep.subr.bf16.mxu1 %v4169_v54  ;;  %v4095_v16 = vld [vmem:[#allocation5 + $0x4f0] ss:$24 sps:$4 sm:$0xff]  }
 0x12e   :  { %2120 = vmatprep.subr.bf16.mxu0 %v4028_v17  ;;  %v4100_v17 = vld [vmem:[#allocation5 + $0x524] ss:$24 sps:$4 sm:$0xff]   ;;  %v4149_v54 = vld [vmem:[#allocation5 + $0x850] ss:$24 sps:$4 sm:$0xff]  }
 0x130   :  { %3626 = vmatpush3.bf16.msra.mxu1 %v4170_v57  ;;  %v4157_v57 = vld [vmem:[#allocation5 + $0x8b4] ss:$24 sps:$4 sm:$0xff]  }
 0x131   :  { %2121 = vmatpush1.bf16.msra.mxu0 %v4026_v18  ;;  %3627 = vmatprep.subr.bf16.mxu1 %v4171_v58  ;;  %v4098_v18 = vld [vmem:[#allocation5 + $0x520] ss:$24 sps:$4 sm:$0xff]   ;;  %v4155_v58 = vld [vmem:[#allocation5 + $0x8b0] ss:$24 sps:$4 sm:$0xff]  }
 0x132   :  { %2122 = vmatprep.subr.bf16.mxu0 %v4034_v19  ;;  %v4103_v19 = vld [vmem:[#allocation5 + $0x554] ss:$24 sps:$4 sm:$0xff]  }
 0x134   :  { %3628 = vmatpush3.bf16.msra.mxu1 %v4172_v61 }
 0x135   :  { %2123 = vmatpush1.bf16.msra.mxu0 %v4032_v20  ;;  %3629 = vmatprep.subr.bf16.mxu1 %v4173_v62  ;;  %v4101_v20 = vld [vmem:[#allocation5 + $0x550] ss:$24 sps:$4 sm:$0xff]  }
 0x136   :  { %2124 = vmatprep.subr.bf16.mxu0 %v4040_v21  ;;  %v4106_v21 = vld [vmem:[#allocation5 + $0x584] ss:$24 sps:$4 sm:$0xff]  }
 0x138   :  { %3630 = vmatpush3.bf16.msra.mxu1 %v4174_v2 }
 0x139   :  { %2125 = vmatpush1.bf16.msra.mxu0 %v4038_v22  ;;  %3631 = vmatprep.subr.bf16.mxu1 %v4175_v5  ;;  %v4104_v22 = vld [vmem:[#allocation5 + $0x580] ss:$24 sps:$4 sm:$0xff]   ;;  %v4179_v5 = vld [vmem:[#allocation7 + $0xc8] sm:$0xff]  }
 0x13a   :  { %2126 = vmatprep.subr.bf16.mxu0 %v4043_v23  ;;  %v4109_v23 = vld [vmem:[#allocation5 + $0x5b4] ss:$24 sps:$4 sm:$0xff]  }
 0x13c   :  { %3632 = vmatpush3.bf16.msra.mxu1 %v4176_v6  ;;  %v4180_v6 = vld [vmem:[#allocation7 + $0x88] sm:$0xff]  }
 0x13d   :  { %2127 = vmatpush1.bf16.msra.mxu0 %v4041_v24  ;;  %3639 = vmatprep.subr.bf16.mxu1 %v4177_v9  ;;  %v4107_v24 = vld [vmem:[#allocation5 + $0x5b0] ss:$24 sps:$4 sm:$0xff]  }
 0x13e   :  { %2128 = vmatprep.subr.bf16.mxu0 %v4046_v25  ;;  %v4112_v25 = vld [vmem:[#allocation5 + $0x5e4] ss:$24 sps:$4 sm:$0xff]   ;;  %v4182_v9 = vld [vmem:[#allocation7 + $0x90] sm:$0xff]  }
 0x141   :  { %2129 = vmatpush1.bf16.msra.mxu0 %v4044_v26  ;;  %v4110_v26 = vld [vmem:[#allocation5 + $0x5e0] ss:$24 sps:$4 sm:$0xff]  }
 0x142   :  { %2130 = vmatprep.subr.bf16.mxu0 %v4049_v27  ;;  %v4115_v27 = vld [vmem:[#allocation5 + $0x614] ss:$24 sps:$4 sm:$0xff]  }
 0x145   :  { %2131 = vmatpush1.bf16.msra.mxu0 %v4047_v28  ;;  %v4113_v28 = vld [vmem:[#allocation5 + $0x610] ss:$24 sps:$4 sm:$0xff]  }
 0x146   :  { %2132 = vmatprep.subr.bf16.mxu0 %v4052_v29  ;;  %v4118_v29 = vld [vmem:[#allocation5 + $0x644] ss:$24 sps:$4 sm:$0xff]  }
 0x149   :  { %2133 = vmatpush1.bf16.msra.mxu0 %v4050_v30  ;;  %v4292_v30 = vld [vmem:[#allocation2 + $0x8] ss:$24 sps:$4 sm:$0xff]  }
 0x14a   :  { %2134 = vmatprep.subr.bf16.mxu0 %v4055_v31  ;;  %v4116_v31 = vld [vmem:[#allocation5 + $0x640] ss:$24 sps:$4 sm:$0xff]  }
 0x14d   :  { %2135 = vmatpush1.bf16.msra.mxu0 %v4053_v32  ;;  %v4293_v32 = vld [vmem:[#allocation2 + $0x14] ss:$24 sps:$4 sm:$0xff]  }
 0x14e   :  { %2136 = vmatprep.subr.bf16.mxu0 %v4058_v33  ;;  %v4121_v33 = vld [vmem:[#allocation5 + $0x674] ss:$24 sps:$4 sm:$0xff]  }
 0x151   :  { %2137 = vmatpush1.bf16.msra.mxu0 %v4056_v34  ;;  %v4119_v34 = vld [vmem:[#allocation5 + $0x670] ss:$24 sps:$4 sm:$0xff]  }
 0x152   :  { %2138 = vmatprep.subr.bf16.mxu0 %v4061_v35  ;;  %v4124_v35 = vld [vmem:[#allocation5 + $0x6a4] ss:$24 sps:$4 sm:$0xff]  }
 0x155   :  { %2139 = vmatpush1.bf16.msra.mxu0 %v4059_v36  ;;  %v4122_v36 = vld [vmem:[#allocation5 + $0x6a0] ss:$24 sps:$4 sm:$0xff]  }
 0x156   :  { %2140 = vmatprep.subr.bf16.mxu0 %v4064_v37  ;;  %v4127_v37 = vld [vmem:[#allocation5 + $0x6d4] ss:$24 sps:$4 sm:$0xff]  }
 0x159   :  { %2141 = vmatpush1.bf16.msra.mxu0 %v4062_v40  ;;  %v4128_v40 = vld [vmem:[#allocation5 + $0x700] ss:$24 sps:$4 sm:$0xff]  }
 0x15a   :  { %2153 = vmatprep.subr.bf16.mxu0 %v4067_v41  ;;  %v4133_v41 = vld [vmem:[#allocation5 + $0x734] ss:$24 sps:$4 sm:$0xff]  }
 0x15c   :  { %2143 = vmatmul.mubr.bf16.vlgmr.msra.gmra.mrb[4].mxu0 %v4290_v47  ;;  %v4142_v47 = vld [vmem:[#allocation5 + $0x7c4] ss:$24 sps:$4 sm:$0xff]  }
 0x15d   :  { %2154 = vmatpush1.bf16.msra.mxu0 %v4065_v44  ;;  %2185 = vmatprep.mubr.bf16.mxu0 %v4291_v51  ;;  %v4134_v44 = vld [vmem:[#allocation5 + $0x760] ss:$24 sps:$4 sm:$0xff]   ;;  %v4148_v51 = vld [vmem:[#allocation5 + $0x824] ss:$24 sps:$4 sm:$0xff]  }
 0x15e   :  { %2155 = vmatprep.subr.bf16.mxu0 %v4070_v45  ;;  %v4139_v45 = vld [vmem:[#allocation5 + $0x794] ss:$24 sps:$4 sm:$0xff]  }
 0x161   :  { %2156 = vmatpush1.bf16.msra.mxu0 %v4068_v50  ;;  %v4143_v50 = vld [vmem:[#allocation5 + $0x7f0] ss:$24 sps:$4 sm:$0xff]  }
 0x162   :  { %2157 = vmatprep.subr.bf16.mxu0 %v4073_v52  ;;  %v4146_v52 = vld [vmem:[#allocation5 + $0x820] ss:$24 sps:$4 sm:$0xff]  }
 0x165   :  { %2158 = vmatpush1.bf16.msra.mxu0 %v4071_v55  ;;  %v4154_v55 = vld [vmem:[#allocation5 + $0x884] ss:$24 sps:$4 sm:$0xff]  }
 0x166   :  { %2159 = vmatprep.subr.bf16.mxu0 %v4076_v56  ;;  %v4152_v56 = vld [vmem:[#allocation5 + $0x880] ss:$24 sps:$4 sm:$0xff]  }
 0x169   :  { %2160 = vmatpush1.bf16.msra.mxu0 %v4074_v59  ;;  %v4162_v59 = vld [vmem:[#allocation5 + $0x8e4] ss:$24 sps:$4 sm:$0xff]  }
 0x16a   :  { %2161 = vmatprep.subr.bf16.mxu0 %v4079_v60  ;;  %v4160_v60 = vld [vmem:[#allocation5 + $0x8e0] ss:$24 sps:$4 sm:$0xff]  }
 0x16d   :  { %2162 = vmatpush1.bf16.msra.mxu0 %v4077_v63 }
 0x16e   :  { %2163 = vmatprep.subr.bf16.mxu0 %v4082_v0 }
 0x171   :  { %2164 = vmatpush1.bf16.msra.mxu0 %v4080_v3 }
 0x172   :  { %2165 = vmatprep.subr.bf16.mxu0 %v4085_v4  ;;  %v4178_v4 = vld [vmem:[#allocation7 + $0x80] sm:$0xff]  }
 0x175   :  { %2166 = vmatpush1.bf16.msra.mxu0 %v4083_v7  ;;  %v4181_v7 = vld [vmem:[#allocation7 + $0xd0] sm:$0xff]  }
 0x176   :  { %2167 = vmatprep.subr.bf16.mxu0 %v4088_v8 }
 0x179   :  { %2168 = vmatpush1.bf16.msra.mxu0 %v4086_v10 }
 0x17a   :  { %2169 = vmatprep.subr.bf16.mxu0 %v4091_v11 }
 0x17d   :  { %2170 = vmatpush1.bf16.msra.mxu0 %v4089_v12 }
 0x17e   :  { %2171 = vmatprep.subr.bf16.mxu0 %v4094_v13 }
 0x181   :  { %2172 = vmatpush1.bf16.msra.mxu0 %v4092_v14 }
 0x182   :  { %2173 = vmatprep.subr.bf16.mxu0 %v4097_v15  ;;  %v4184_v15 = vld [vmem:[#allocation7 + $0x98] sm:$0xff]  }
 0x185   :  { %2174 = vmatpush1.bf16.msra.mxu0 %v4095_v16  ;;  %v4185_v16 = vld [vmem:[#allocation7 + $0xe0] sm:$0xff]  }
 0x186   :  { %2175 = vmatprep.subr.bf16.mxu0 %v4100_v17  ;;  %v4186_v17 = vld [vmem:[#allocation7 + $0xa0] sm:$0xff]  }
 0x189   :  { %2176 = vmatpush1.bf16.msra.mxu0 %v4098_v18  ;;  %v4187_v18 = vld [vmem:[#allocation7 + $0xe8] sm:$0xff]  }
 0x18a   :  { %2177 = vmatprep.subr.bf16.mxu0 %v4103_v19  ;;  %v4188_v19 = vld [vmem:[#allocation7 + $0xa8] sm:$0xff]  }
 0x18d   :  { %2178 = vmatpush1.bf16.msra.mxu0 %v4101_v20  ;;  %v4189_v20 = vld [vmem:[#allocation7 + $0xf0] sm:$0xff]  }
 0x18e   :  { %2179 = vmatprep.subr.bf16.mxu0 %v4106_v21  ;;  %v4190_v21 = vld [vmem:[#allocation7 + $0xb0] sm:$0xff]  }
 0x191   :  { %2180 = vmatpush1.bf16.msra.mxu0 %v4104_v22  ;;  %v4191_v22 = vld [vmem:[#allocation7 + $0xf8] sm:$0xff]  }
 0x192   :  { %2181 = vmatprep.subr.bf16.mxu0 %v4109_v23  ;;  %v4192_v23 = vld [vmem:[#allocation7 + $0xb8] sm:$0xff]  }
 0x195   :  { %2182 = vmatpush1.bf16.msra.mxu0 %v4107_v24  ;;  %v4193_v24 = vld [vmem:[#allocation7 + $0x140] sm:$0xff]  }
 0x196   :  { %2183 = vmatprep.subr.bf16.mxu0 %v4112_v25  ;;  %v4194_v25 = vld [vmem:[#allocation7 + $0x100] sm:$0xff]  }
 0x199   :  { %2184 = vmatpush1.bf16.msra.mxu0 %v4110_v26  ;;  %v4195_v26 = vld [vmem:[#allocation7 + $0x148] sm:$0xff]  }
 0x19a   :  { %2196 = vmatprep.subr.bf16.mxu0 %v4115_v27  ;;  %v4196_v27 = vld [vmem:[#allocation7 + $0x108] sm:$0xff]  }
 0x19c   :  { %2186 = vmatmul.mubr.bf16.vlgmr.msra.gmra.mrb[4].mxu0 %v4292_v30  ;;  %v4199_v30 = vld [vmem:[#allocation7 + $0x158] sm:$0xff]  }
 0x19d   :  { %2197 = vmatpush1.bf16.msra.mxu0 %v4113_v28  ;;  %2228 = vmatprep.mubr.bf16.mxu0 %v4293_v32  ;;  %v4197_v28 = vld [vmem:[#allocation7 + $0x150] sm:$0xff]   ;;  %v4201_v32 = vld [vmem:[#allocation7 + $0x160] sm:$0xff]  }
 0x19e   :  { %2198 = vmatprep.subr.bf16.mxu0 %v4118_v29  ;;  %v4198_v29 = vld [vmem:[#allocation7 + $0x110] sm:$0xff]  }
 0x1a1   :  { %2199 = vmatpush1.bf16.msra.mxu0 %v4116_v31  ;;  %v4200_v31 = vld [vmem:[#allocation7 + $0x118] sm:$0xff]  }
 0x1a2   :  { %2200 = vmatprep.subr.bf16.mxu0 %v4121_v33  ;;  %v4202_v33 = vld [vmem:[#allocation7 + $0x120] sm:$0xff]  }
 0x1a5   :  { %2201 = vmatpush1.bf16.msra.mxu0 %v4119_v34  ;;  %v4203_v34 = vld [vmem:[#allocation7 + $0x168] sm:$0xff]  }
 0x1a6   :  { %2202 = vmatprep.subr.bf16.mxu0 %v4124_v35  ;;  %v4204_v35 = vld [vmem:[#allocation7 + $0x128] sm:$0xff]  }
 0x1a9   :  { %2203 = vmatpush1.bf16.msra.mxu0 %v4122_v36  ;;  %v4205_v36 = vld [vmem:[#allocation7 + $0x170] sm:$0xff]  }
 0x1aa   :  { %2204 = vmatprep.subr.bf16.mxu0 %v4127_v37  ;;  %v4206_v37 = vld [vmem:[#allocation7 + $0x130] sm:$0xff]  }
 0x1ad   :  { %2205 = vmatpush1.bf16.msra.mxu0 %v4125_v38  ;;  %v4207_v38 = vld [vmem:[#allocation7 + $0x178] sm:$0xff]  }
 0x1ae   :  { %2206 = vmatprep.subr.bf16.mxu0 %v4130_v39  ;;  %v4208_v39 = vld [vmem:[#allocation7 + $0x138] sm:$0xff]  }
 0x1b1   :  { %2207 = vmatpush1.bf16.msra.mxu0 %v4128_v40 }
 0x1b2   :  { %2208 = vmatprep.subr.bf16.mxu0 %v4133_v41 }
 0x1b5   :  { %2209 = vmatpush1.bf16.msra.mxu0 %v4131_v42 }
 0x1b6   :  { %2210 = vmatprep.subr.bf16.mxu0 %v4136_v43 }
 0x1b9   :  { %2211 = vmatpush1.bf16.msra.mxu0 %v4134_v44 }
 0x1ba   :  { %2212 = vmatprep.subr.bf16.mxu0 %v4139_v45 }
 0x1bd   :  { %2213 = vmatpush1.bf16.msra.mxu0 %v4137_v46 }
 0x1be   :  { %2214 = vmatprep.subr.bf16.mxu0 %v4142_v47 }
 0x1c1   :  { %2215 = vmatpush1.bf16.msra.mxu0 %v4140_v48 }
 0x1c2   :  { %2216 = vmatprep.subr.bf16.mxu0 %v4145_v49 }
 0x1c5   :  { %2217 = vmatpush1.bf16.msra.mxu0 %v4143_v50 }
 0x1c6   :  { %2218 = vmatprep.subr.bf16.mxu0 %v4148_v51 }
 0x1c9   :  { %2219 = vmatpush1.bf16.msra.mxu0 %v4146_v52  ;;  %v3520_v52 = vld [vmem:[#allocation8] ss:$0 sm:$0xff] }
 0x1ca   :  { %2220 = vmatprep.subr.bf16.mxu0 %v4151_v53 }
 0x1cd   :  { %2221 = vmatpush1.bf16.msra.mxu0 %v4149_v54 }
 0x1ce   :  { %2222 = vmatprep.subr.bf16.mxu0 %v4154_v55 }
 0x1d1   :  { %2223 = vmatpush1.bf16.msra.mxu0 %v4152_v56 }
 0x1d2   :  { %2224 = vmatprep.subr.bf16.mxu0 %v4157_v57 }
 0x1d5   :  { %2225 = vmatpush1.bf16.msra.mxu0 %v4155_v58 }
 0x1d6   :  { %2226 = vmatprep.subr.bf16.mxu0 %v4162_v59 }
 0x1d9   :  { %2227 = vmatpush1.bf16.msra.mxu0 %v4160_v60 }
 0x1dc   :  { %2229 = vmatmul.mubr.bf16.vlgmr.msra.gmra.mrb[4].mxu0 %v4561_v1  ;;  %v4183_v1 = vld [vmem:[#allocation7 + $0xd8] sm:$0xff]  }
 0x1ef   :  { %v1972_v61 = vpop.f32.mrb[0].mxu0 }
 0x1f0   :  { %v1974_v62 = vpop.f32.mrb[1].mxu0 }
 0x1f1   :  { %v1976_v63 = vpop.f32.mrb[2].mxu0 }
 0x1f2   :  { %v2239_v0 = vpack.c.bf16 %v1976_v63, %v1972_v61  ;;  %v1978_v2 = vpop.f32.mrb[3].mxu0  ;;  %v2101_v8 = vpop.f32.mrb[0].mxu1 }
 0x1f3   :  { %v2240_v3 = vpack.c.bf16 %v1978_v2, %v1974_v62  ;;  %v2103_v10 = vpop.f32.mrb[1].mxu1 }
 0x1f4   :  { %v2105_v11 = vpop.f32.mrb[2].mxu1 }
 0x1f5   :  { %2668 = vmatprep.mubr.bf16.mxu1 %v2240_v3  ;;  %v2241_v12 = vpack.c.bf16 %v2105_v11, %v2101_v8  ;;  %v2107_v13 = vpop.f32.mrb[3].mxu1  ;;  %v4209_v8 = vld [vmem:[#allocation10] ss:$24 sps:$4 sm:$0xff]   ;;  %v4217_v11 = vld [vmem:[#allocation10 + $0x64] ss:$24 sps:$4 sm:$0xff]  }
 0x1f6   :  { %2669 = vmatmul.mubr.bf16.vlgmr.msra.gmra.mrb[4].mxu1 %v2239_v0  ;;  %v2242_v14 = vpack.c.bf16 %v2107_v13, %v2103_v10  ;;  %v4214_v10 = vld [vmem:[#allocation10 + $0x34] ss:$24 sps:$4 sm:$0xff]  }
 0x1f7   :  { %3640 = vmatpush3.bf16.msra.mxu1 %v4178_v4  ;;  %v4220_v13 = vld [vmem:[#allocation10 + $0x94] ss:$24 sps:$4 sm:$0xff]  }
 0x1f8   :  { %3641 = vmatprep.subr.bf16.mxu1 %v4179_v5  ;;  %2709 = vmatprep.mubr.bf16.mxu1 %v2242_v14  ;;  %v4218_v14 = vld [vmem:[#allocation10 + $0x90] ss:$24 sps:$4 sm:$0xff]  }
 0x1fb   :  { %3642 = vmatpush3.bf16.msra.mxu1 %v4180_v6 }
 0x1fc   :  { %3643 = vmatprep.subr.bf16.mxu1 %v4181_v7 }
 0x1ff   :  { %3644 = vmatpush3.bf16.msra.mxu1 %v4182_v9  ;;  %v4211_v9 = vld [vmem:[#allocation10 + $0x4] ss:$24 sps:$4 sm:$0xff]  }
 0x200   :  { %3645 = vmatprep.subr.bf16.mxu1 %v4183_v1  ;;  %v4212_v1 = vld [vmem:[#allocation10 + $0x30] ss:$24 sps:$4 sm:$0xff]  }
 0x203   :  { %3646 = vmatpush3.bf16.msra.mxu1 %v4184_v15 }
 0x204   :  { %3647 = vmatprep.subr.bf16.mxu1 %v4185_v16 }
 0x207   :  { %3648 = vmatpush3.bf16.msra.mxu1 %v4186_v17 }
 0x208   :  { %3649 = vmatprep.subr.bf16.mxu1 %v4187_v18 }
 0x20b   :  { %3650 = vmatpush3.bf16.msra.mxu1 %v4188_v19 }
 0x20c   :  { %3651 = vmatprep.subr.bf16.mxu1 %v4189_v20 }
 0x20f   :  { %3652 = vmatpush3.bf16.msra.mxu1 %v4190_v21 }
 0x210   :  { %3653 = vmatprep.subr.bf16.mxu1 %v4191_v22 }
 0x213   :  { %3654 = vmatpush3.bf16.msra.mxu1 %v4192_v23  ;;  %v4221_v23 = vld [vmem:[#allocation10 + $0xc0] ss:$24 sps:$4 sm:$0xff]  }
 0x214   :  { %3661 = vmatprep.subr.bf16.mxu1 %v4193_v24  ;;  %v4223_v24 = vld [vmem:[#allocation10 + $0xc4] ss:$24 sps:$4 sm:$0xff]  }
 0x216   :  { %2710 = vmatmul.mubr.bf16.vlgmr.msra.gmra.mrb[8].mxu1 %v2241_v12  ;;  %v4215_v12 = vld [vmem:[#allocation10 + $0x60] ss:$24 sps:$4 sm:$0xff]  }
 0x217   :  { %3662 = vmatpush3.bf16.msra.mxu1 %v4194_v25  ;;  %v4224_v25 = vld [vmem:[#allocation10 + $0xf0] ss:$24 sps:$4 sm:$0xff]  }
 0x218   :  { %3663 = vmatprep.subr.bf16.mxu1 %v4195_v26  ;;  %v4226_v26 = vld [vmem:[#allocation10 + $0xf4] ss:$24 sps:$4 sm:$0xff]  }
 0x21b   :  { %3664 = vmatpush3.bf16.msra.mxu1 %v4196_v27  ;;  %v4229_v27 = vld [vmem:[#allocation10 + $0x124] ss:$24 sps:$4 sm:$0xff]  }
 0x21c   :  { %3665 = vmatprep.subr.bf16.mxu1 %v4197_v28  ;;  %v4227_v28 = vld [vmem:[#allocation10 + $0x120] ss:$24 sps:$4 sm:$0xff]  }
 0x21f   :  { %3666 = vmatpush3.bf16.msra.mxu1 %v4198_v29  ;;  %v4443_v29 = vmov 0  }
 0x220   :  { %3667 = vmatprep.subr.bf16.mxu1 %v4199_v30  ;;  %v4232_v30 = vld [vmem:[#allocation10 + $0x154] ss:$24 sps:$4 sm:$0xff]  }
 0x223   :  { %3668 = vmatpush3.bf16.msra.mxu1 %v4200_v31  ;;  %v4230_v31 = vld [vmem:[#allocation10 + $0x150] ss:$24 sps:$4 sm:$0xff]  }
 0x224   :  { %3669 = vmatprep.subr.bf16.mxu1 %v4201_v32  ;;  %v4235_v32 = vld [vmem:[#allocation10 + $0xc] ss:$24 sps:$4 sm:$0xff]  }
 0x227   :  { %3670 = vmatpush3.bf16.msra.mxu1 %v4202_v33 }
 0x228   :  { %3671 = vmatprep.subr.bf16.mxu1 %v4203_v34 }
 0x22b   :  { %3672 = vmatpush3.bf16.msra.mxu1 %v4204_v35 }
 0x22c   :  { %3673 = vmatprep.subr.bf16.mxu1 %v4205_v36 }
 0x22f   :  { %3674 = vmatpush3.bf16.msra.mxu1 %v4206_v37 }
 0x230   :  { %3675 = vmatprep.subr.bf16.mxu1 %v4207_v38 }
 0x233   :  { %3676 = vmatpush3.bf16.msra.mxu1 %v4208_v39  ;;  %v4233_v39 = vld [vmem:[#allocation10 + $0x8] ss:$24 sps:$4 sm:$0xff]  }
 0x234   :  { %3066 = vmatprep.subr.bf16.mxu1 %v4211_v9 }
 0x2af   :  { %v2230_v40 = vpop.f32.mrb[4].mxu0 }
 0x2b0   :  { %v2232_v41 = vpop.f32.mrb[5].mxu0 }
 0x2b1   :  { %v2234_v42 = vpop.f32.mrb[6].mxu0 }
 0x2b2   :  { %v2243_v43 = vpack.c.bf16 %v2234_v42, %v2230_v40  ;;  %v2236_v44 = vpop.f32.mrb[7].mxu0  ;;  %v4236_v42 = vld [vmem:[#allocation10 + $0x38] ss:$24 sps:$4 sm:$0xff]  }
 0x2b3   :  { %v2244_v45 = vpack.c.bf16 %v2236_v44, %v2232_v41  ;;  %v4238_v41 = vld [vmem:[#allocation10 + $0x3c] ss:$24 sps:$4 sm:$0xff]   ;;  %v4239_v44 = vld [vmem:[#allocation10 + $0x68] ss:$24 sps:$4 sm:$0xff]  }
 0x2b5   :  { %2750 = vmatprep.mubr.bf16.mxu1 %v2244_v45  ;;  %v4244_v45 = vld [vmem:[#allocation10 + $0x9c] ss:$24 sps:$4 sm:$0xff]  }
 0x2b6   :  { %2751 = vmatmul.mubr.bf16.vlgmr.msra.gmra.mrb[12].mxu1 %v2243_v43  ;;  %v4241_v43 = vld [vmem:[#allocation10 + $0x6c] ss:$24 sps:$4 sm:$0xff]  }
 0x2b7   :  { %3067 = vmatpush1.bf16.msra.mxu1 %v4209_v8  ;;  %3098 = vmatprep.mubr.bf16.mxu1 %v4443_v29 }
 0x2b8   :  { %3068 = vmatprep.subr.bf16.mxu1 %v4214_v10 }
 0x2bb   :  { %3069 = vmatpush1.bf16.msra.mxu1 %v4212_v1 }
 0x2bc   :  { %3070 = vmatprep.subr.bf16.mxu1 %v4217_v11 }
 0x2bf   :  { %3071 = vmatpush1.bf16.msra.mxu1 %v4215_v12 }
 0x2c0   :  { %3072 = vmatprep.subr.bf16.mxu1 %v4220_v13 }
 0x2c3   :  { %3073 = vmatpush1.bf16.msra.mxu1 %v4218_v14 }
 0x2c4   :  { %3074 = vmatprep.subr.bf16.mxu1 %v4223_v24 }
 0x2c7   :  { %3075 = vmatpush1.bf16.msra.mxu1 %v4221_v23 }
 0x2c8   :  { %3076 = vmatprep.subr.bf16.mxu1 %v4226_v26 }
 0x2c9   :  { %v3633_v46 = vpop.f32.mrb[4].mxu1 }
 0x2ca   :  { %v3634_v47 = vpop.f32.mrb[5].mxu1 }
 0x2cb   :  { %v3635_v48 = vadd.f32 %v3634_v47, %v3633_v46  ;;  %v3636_v49 = vpop.f32.mrb[6].mxu1  ;;  %3077 = vmatpush1.bf16.msra.mxu1 %v4224_v25  ;;  %v4242_v46 = vld [vmem:[#allocation10 + $0x98] ss:$24 sps:$4 sm:$0xff]   ;;  %v4247_v47 = vld [vmem:[#allocation10 + $0xcc] ss:$24 sps:$4 sm:$0xff]  }
 0x2cc   :  { %v3637_v50 = vpop.f32.mrb[7].mxu1  ;;  %3078 = vmatprep.subr.bf16.mxu1 %v4229_v27 }
 0x2cd   :  { %v3638_v51 = vadd.f32 %v3637_v50, %v3636_v49  ;;  %v2671_v55 = vadd.f32 %v3635_v48, %v3520_v52  ;;  %v4245_v48 = vld [vmem:[#allocation10 + $0xc8] ss:$24 sps:$4 sm:$0xff]   ;;  %v4250_v49 = vld [vmem:[#allocation10 + $0xfc] ss:$24 sps:$4 sm:$0xff]   ;;  %v4248_v50 = vld [vmem:[#allocation10 + $0xf8] ss:$24 sps:$4 sm:$0xff]  }
 0x2cf   :  { %v2674_v59 = vadd.f32 %v3638_v51, %v3520_v52  ;;  %3079 = vmatpush1.bf16.msra.mxu1 %v4227_v28  ;;  %v4253_v51 = vld [vmem:[#allocation10 + $0x12c] ss:$24 sps:$4 sm:$0xff]   ;;  %v4251_v52 = vld [vmem:[#allocation10 + $0x128] ss:$24 sps:$4 sm:$0xff]  }
 0x2d0   :  { %3080 = vmatprep.subr.bf16.mxu1 %v4232_v30 }
 0x2d3   :  { %3081 = vmatpush1.bf16.msra.mxu1 %v4230_v31 }
 0x2d4   :  { %3109 = vmatprep.subr.bf16.mxu1 %v4235_v32 }
 0x2e9   :  { %v3655_v53 = vpop.f32.mrb[8].mxu1 }
 0x2ea   :  { %v3656_v54 = vpop.f32.mrb[9].mxu1 }
 0x2eb   :  { %v3657_v56 = vadd.f32 %v3656_v54, %v3655_v53  ;;  %v3658_v57 = vpop.f32.mrb[10].mxu1  ;;  %v4256_v53 = vld [vmem:[#allocation10 + $0x15c] ss:$24 sps:$4 sm:$0xff]   ;;  %v4254_v54 = vld [vmem:[#allocation10 + $0x158] ss:$24 sps:$4 sm:$0xff]  }
 0x2ec   :  { %v3659_v58 = vpop.f32.mrb[11].mxu1 }
 0x2ed   :  { %v2712_v60 = vadd.f32 %v3657_v56, %v2671_v55  ;;  %v3660_v61 = vadd.f32 %v3659_v58, %v3658_v57  ;;  %v4259_v55 = vld [vmem:[#allocation10 + $0x14] ss:$24 sps:$4 sm:$0xff]   ;;  %v4257_v56 = vld [vmem:[#allocation10 + $0x10] ss:$24 sps:$4 sm:$0xff]   ;;  %v4262_v57 = vld [vmem:[#allocation10 + $0x44] ss:$24 sps:$4 sm:$0xff]  }
 0x2ee   :  { %v4260_v58 = vld [vmem:[#allocation10 + $0x40] ss:$24 sps:$4 sm:$0xff]  }
 0x2ef   :  { %v2715_v62 = vadd.f32 %v3660_v61, %v2674_v59  ;;  %v4265_v59 = vld [vmem:[#allocation10 + $0x74] ss:$24 sps:$4 sm:$0xff]   ;;  %v4268_v61 = vld [vmem:[#allocation10 + $0xa4] ss:$24 sps:$4 sm:$0xff]  }
 0x389   :  { %v3677_v63 = vpop.f32.mrb[12].mxu1 }
 0x38a   :  { %v3678_v0 = vpop.f32.mrb[13].mxu1 }
 0x38b   :  { %v3679_v2 = vadd.f32 %v3678_v0, %v3677_v63  ;;  %v3680_v3 = vpop.f32.mrb[14].mxu1  ;;  %v4271_v63 = vld [vmem:[#allocation10 + $0xd4] ss:$24 sps:$4 sm:$0xff]   ;;  %v4269_v0 = vld [vmem:[#allocation10 + $0xd0] ss:$24 sps:$4 sm:$0xff]  }
 0x38c   :  { %v3681_v4 = vpop.f32.mrb[15].mxu1 }
 0x38d   :  { %v3682_v5 = vadd.f32 %v3681_v4, %v3680_v3  ;;  %v2753_v6 = vadd.f32 %v3679_v2, %v2712_v60  ;;  %v4263_v60 = vld [vmem:[#allocation10 + $0x70] ss:$24 sps:$4 sm:$0xff]   ;;  %v4274_v2 = vld [vmem:[#allocation10 + $0x104] ss:$24 sps:$4 sm:$0xff]   ;;  %v4272_v3 = vld [vmem:[#allocation10 + $0x100] ss:$24 sps:$4 sm:$0xff]  }
 0x38e   :  { %v4277_v4 = vld [vmem:[#allocation10 + $0x134] ss:$24 sps:$4 sm:$0xff]  }
 0x38f   :  { %2759 = vmax.xlane.f32.xlu0 %v2753_v6  ;;  %v2756_v7 = vadd.f32 %v3682_v5, %v2715_v62  ;;  %v4266_v62 = vld [vmem:[#allocation10 + $0xa0] ss:$24 sps:$4 sm:$0xff]   ;;  %v4275_v5 = vld [vmem:[#allocation10 + $0x130] ss:$24 sps:$4 sm:$0xff]  }
 0x393   :  { %2761 = vmax.xlane.f32.xlu0 %v2756_v7 }
 0x41c   :  { %v2760_v15 = vpop.xlane.xlu0 %2759 }
 0x41d   :  { %v2763_v16 = vsub.f32 %v2753_v6, %v2760_v15  ;;  %v4280_v6 = vld [vmem:[#allocation10 + $0x164] ss:$24 sps:$4 sm:$0xff]  }
 0x41f   :  { %v2765_v17 = vmul.f32 1.442695, %v2763_v16 }
 0x420   :  { %v2762_v18 = vpop.xlane.xlu0 %2761 }
 0x421   :  { %4281 = vpow2.f32 %v2765_v17  ;;  %v2764_v19 = vsub.f32 %v2756_v7, %v2762_v18  ;;  %v4278_v7 = vld [vmem:[#allocation10 + $0x160] ss:$24 sps:$4 sm:$0xff]  }
 0x423   :  { %v2767_v20 = vmul.f32 1.442695, %v2764_v19 }
 0x425   :  { %4283 = vpow2.f32 %v2767_v20 }
 0x42b   :  { %v4282_v21 = vpop.eup %4281 }
 0x42c   :  { %2769 = vadd.xlane.f32.xlu1 %v4282_v21 }
 0x42f   :  { %v4284_v22 = vpop.eup %4283 }
 0x430   :  { %2771 = vadd.xlane.f32.xlu1 %v4284_v22 }
 0x4b9   :  { %v2770_v33 = vpop.xlane.xlu1 %2769 }
 0x4ba   :  { %4285 = vrcp.f32 %v2770_v33 }
 0x4bd   :  { %v2772_v34 = vpop.xlane.xlu1 %2771 }
 0x4be   :  { %4287 = vrcp.f32 %v2772_v34 }
 0x4c4   :  { %v4286_v35 = vpop.eup %4285 }
 0x4c5   :  { %v2775_v37 = vmul.f32 %v4286_v35, %v4282_v21 }
 0x4c8   :  { %v4288_v36 = vpop.eup %4287 }
 0x4c9   :  { %v2776_v38 = vmul.f32 %v4288_v36, %v4284_v22 }
 0x4cb   :  { %v4566_v40 = vpack.c.bf16 %v2776_v38, %v2775_v37 }
 0x4cd   :  { %3099 = vmatmul.mubr.bf16.vlgmr.msra.gmra.mrb[16].mxu1 %v4566_v40 }
 0x4ce   :  { %3110 = vmatpush1.bf16.msra.mxu1 %v4233_v39  ;;  %3141 = vmatprep.mubr.bf16.mxu1 %v4443_v29 }
 0x4cf   :  { %3111 = vmatprep.subr.bf16.mxu1 %v4238_v41 }
 0x4d2   :  { %3112 = vmatpush1.bf16.msra.mxu1 %v4236_v42 }
 0x4d3   :  { %3113 = vmatprep.subr.bf16.mxu1 %v4241_v43 }
 0x4d6   :  { %3114 = vmatpush1.bf16.msra.mxu1 %v4239_v44 }
 0x4d7   :  { %3115 = vmatprep.subr.bf16.mxu1 %v4244_v45 }
 0x4da   :  { %3116 = vmatpush1.bf16.msra.mxu1 %v4242_v46 }
 0x4db   :  { %3117 = vmatprep.subr.bf16.mxu1 %v4247_v47 }
 0x4de   :  { %3118 = vmatpush1.bf16.msra.mxu1 %v4245_v48 }
 0x4df   :  { %3119 = vmatprep.subr.bf16.mxu1 %v4250_v49 }
 0x4e2   :  { %3120 = vmatpush1.bf16.msra.mxu1 %v4248_v50 }
 0x4e3   :  { %3121 = vmatprep.subr.bf16.mxu1 %v4253_v51 }
 0x4e6   :  { %3122 = vmatpush1.bf16.msra.mxu1 %v4251_v52 }
 0x4e7   :  { %3123 = vmatprep.subr.bf16.mxu1 %v4256_v53 }
 0x4ea   :  { %3124 = vmatpush1.bf16.msra.mxu1 %v4254_v54 }
 0x4eb   :  { %3152 = vmatprep.subr.bf16.mxu1 %v4259_v55 }
 0x4ed   :  { %3142 = vmatmul.mubr.bf16.vlgmr.msra.gmra.mrb[20].mxu1 %v4566_v40 }
 0x4ee   :  { %3153 = vmatpush1.bf16.msra.mxu1 %v4257_v56  ;;  %3184 = vmatprep.mubr.bf16.mxu1 %v4443_v29 }
 0x4ef   :  { %3154 = vmatprep.subr.bf16.mxu1 %v4262_v57 }
 0x4f2   :  { %3155 = vmatpush1.bf16.msra.mxu1 %v4260_v58 }
 0x4f3   :  { %3156 = vmatprep.subr.bf16.mxu1 %v4265_v59 }
 0x4f6   :  { %3157 = vmatpush1.bf16.msra.mxu1 %v4263_v60 }
 0x4f7   :  { %3158 = vmatprep.subr.bf16.mxu1 %v4268_v61 }
 0x4fa   :  { %3159 = vmatpush1.bf16.msra.mxu1 %v4266_v62 }
 0x4fb   :  { %3160 = vmatprep.subr.bf16.mxu1 %v4271_v63 }
 0x4fe   :  { %3161 = vmatpush1.bf16.msra.mxu1 %v4269_v0 }
 0x4ff   :  { %3162 = vmatprep.subr.bf16.mxu1 %v4274_v2 }
 0x502   :  { %3163 = vmatpush1.bf16.msra.mxu1 %v4272_v3 }
 0x503   :  { %3164 = vmatprep.subr.bf16.mxu1 %v4277_v4 }
 0x506   :  { %3165 = vmatpush1.bf16.msra.mxu1 %v4275_v5 }
 0x507   :  { %3166 = vmatprep.subr.bf16.mxu1 %v4280_v6 }
 0x50a   :  { %3167 = vmatpush1.bf16.msra.mxu1 %v4278_v7 }
 0x50d   :  { %3185 = vmatmul.mubr.bf16.vlgmr.msra.gmra.mrb[24].mxu1 %v4566_v40 }
 0x5a0   :  { %v3100_v8 = vpop.f32.mrb[16].mxu1 }
 0x5a1   :  { %3195 = vst [vmem:[#allocation11] sm:$0xff] %v3100_v8  ;;  %v3102_v9 = vpop.f32.mrb[17].mxu1 }
 0x5a2   :  { %3196 = vst [vmem:[#allocation11 + $0x8] sm:$0xff] %v3102_v9  ;;  %v3104_v10 = vpop.f32.mrb[18].mxu1 }
 0x5a3   :  { %3201 = vst [vmem:[#allocation11 + $0x30] sm:$0xff] %v3104_v10  ;;  %v3106_v1 = vpop.f32.mrb[19].mxu1 }
 0x5a4   :  { %3202 = vst [vmem:[#allocation11 + $0x38] sm:$0xff] %v3106_v1 }
 0x5c0   :  { %v3143_v11 = vpop.f32.mrb[20].mxu1 }
 0x5c1   :  { %3197 = vst [vmem:[#allocation11 + $0x10] sm:$0xff] %v3143_v11  ;;  %v3145_v12 = vpop.f32.mrb[21].mxu1 }
 0x5c2   :  { %3198 = vst [vmem:[#allocation11 + $0x18] sm:$0xff] %v3145_v12  ;;  %v3147_v13 = vpop.f32.mrb[22].mxu1 }
 0x5c3   :  { %3203 = vst [vmem:[#allocation11 + $0x40] sm:$0xff] %v3147_v13  ;;  %v3149_v14 = vpop.f32.mrb[23].mxu1 }
 0x5c4   :  { %3204 = vst [vmem:[#allocation11 + $0x48] sm:$0xff] %v3149_v14 }
 0x5e0   :  { %v3186_v15 = vpop.f32.mrb[24].mxu1 }
 0x5e1   :  { %3199 = vst [vmem:[#allocation11 + $0x20] sm:$0xff] %v3186_v15  ;;  %v3188_v16 = vpop.f32.mrb[25].mxu1 }
 0x5e2   :  { %3200 = vst [vmem:[#allocation11 + $0x28] sm:$0xff] %v3188_v16  ;;  %v3190_v17 = vpop.f32.mrb[26].mxu1 }
 0x5e3   :  { %3205 = vst [vmem:[#allocation11 + $0x50] sm:$0xff] %v3190_v17  ;;  %v3192_v18 = vpop.f32.mrb[27].mxu1 }
 0x5e4   :  { %3206 = vst [vmem:[#allocation11 + $0x58] sm:$0xff] %v3192_v18 }
 0x5e5   :  { %4415 = shalt.err (!%p4412_p2)
}
 0x5e6   :  { %s4416_s8 = scalar_lea.hbm %s4588_s5, 1536 }
 0x5e7   :  { %p4417_p3 = scmp.ne.s32.totalorder %s4588_s5, %s4416_s8  ;;  %p4420_p4 = scmp.lt.u32.totalorder %s4416_s8, %s4588_s5 }
 0x5e9   :  { %p4422_p5 = pnand %p4420_p4, %p4417_p3 }
 0x5eb   :  { %4425 = shalt.err (!%p4422_p5)
}
 0x5ec   :  { %s4445_s13 = smov 768   ;;  %s4446_s14 = smov 48  }
 0x5ed   :  { %3218 = dma.vmem_to_hbm [thread:$0]  %s3213_s30, 1536, %s4588_s5, [#allocation4], %s4445_s13, %s4445_s13, %s4446_s14  }
 0x5ee   :  { %4432 = dma.done.wait [#allocation4], 1536  }
 0x5ef   :  { %4433 = vsyncadd [#allocation4], 4294965760 }
 0x5f0   :  { %3222 = vsyncpa [#allocation3], 1 }
 0x5f1   :  { %3223 = vsyncpa [#allocation6], 1 }
 0x5f2   :  { %3224 = vsyncpa [#allocation9], 1 }
 0x5f3   :  { %3225 = vsyncpa [#allocation4], 1 }

</bundles_post_ra>
